<compile_context>
chip_gen: v7x
topology: tpu7x:2x2x1
jax: 0.10.0
libtpu: 0.0.40
codegen_flags: <defaults>
</compile_context>

<pallas_src>
import jax
import jax.numpy as jnp
from jax.experimental import pallas as pl
from jax.experimental.pallas import tpu as pltpu

STATE_DIM = 3
ACTION_DIM = 1
HIDDEN = 256


def _round_up(x, m):
    return -(-x // m) * m


def agent_forward_kernel(s_ref, w1t_ref, b1_ref, w2t_ref, b2_ref, w3m_ref, b3m_ref, o_ref):
    s = s_ref[...]            # [3, TB]  f32, batch on lanes
    w1t = w1t_ref[...]        # [H, 3]   f32 (torch [out, in] layout)

    # Layer 1 (K=3): three VPU FMAs.  s[k:k+1, :] broadcasts down sublanes (stride-0).
    h1 = (w1t[:, 0:1] * s[0:1, :]
          + w1t[:, 1:2] * s[1:2, :]
          + w1t[:, 2:3] * s[2:3, :]
          + b1_ref[...])
    h1 = jnp.maximum(h1, 0.0)                                   # [H, TB] f32

    # Layer 2: the only real matmul; bf16 x bf16 on the MXU with f32 accumulation.
    h2 = jnp.dot(w2t_ref[...], h1.astype(jnp.bfloat16),
                 preferred_element_type=jnp.float32) + b2_ref[...]
    h2 = jnp.maximum(h2, 0.0)                                   # [H, TB] f32

    # Layer 3 (mean head only; log_std column pre-sliced away in the wrapper):
    # N=1 -> VPU multiply + sublane (XLU) reduce instead of an MXU matmul.
    mean = jnp.sum(h2 * w3m_ref[...], axis=0, keepdims=True) + b3m_ref[...]   # [1, TB]

    # reparametrize(deterministic=True): action = tanh(mean); lane-dense store.
    o_ref[...] = jnp.tanh(mean)


def agent_forward(state, params, *, tile_b=1024):
    """state: [B, 3] float32 -> action: [B, 1] float32 (deterministic tanh(mean))."""
    w1t, b1, w2t, b2, w3m, b3m = params
    B = state.shape[0]

    # Tile selection: lane-dense (multiple of 128), big tiles to amortize per-grid-step
    # overhead, and >= 2 grid steps when the batch is big enough (2 TCs on v7x).
    tile_b = max(128, _round_up(tile_b, 128))
    B_pad = _round_up(B, 128)
    TILE_B = min(tile_b, B_pad)
    if B_pad >= 2 * 128 and B_pad <= TILE_B:
        TILE_B = _round_up(-(-B_pad // 2), 128)
    B_pad = _round_up(B_pad, TILE_B)
    grid = (B_pad // TILE_B,)

    # Batch-on-lanes layout: [3, B_pad].  Padded columns compute garbage actions that
    # are sliced off below.
    s_t = jnp.transpose(state)
    if B_pad != B:
        s_t = jnp.pad(s_t, ((0, 0), (0, B_pad - B)))

    const = lambda shape: pl.BlockSpec(shape, lambda i: (0, 0))  # weights: VMEM-resident

    out = pl.pallas_call(
        agent_forward_kernel,
        out_shape=jax.ShapeDtypeStruct((1, B_pad), jnp.float32),
        grid=grid,
        in_specs=[
            pl.BlockSpec((STATE_DIM, TILE_B), lambda i: (0, i)),  # state^T, blocked over lanes
            const((HIDDEN, STATE_DIM)),   # w1^T  f32
            const((HIDDEN, 1)),           # b1    f32
            const((HIDDEN, HIDDEN)),      # w2^T  bf16
            const((HIDDEN, 1)),           # b2    f32
            const((HIDDEN, 1)),           # w3 mean column, f32
            const((1, 1)),                # b3 mean bias,   f32
        ],
        out_specs=pl.BlockSpec((1, TILE_B), lambda i: (0, i)),    # lane-dense output row
        compiler_params=pltpu.CompilerParams(dimension_semantics=("parallel",)),
    )(s_t, w1t, b1, w2t, b2, w3m, b3m)

    return jnp.reshape(out[0, :B], (B, ACTION_DIM))


def init_actor_params(key):
    """Deterministic init matching nn.Linear shapes (torch [out, in] layout).

    w2 is stored in bf16 (the DMA-dominant operand); everything else stays f32.
    Only the mean row of the output head is kept (log_std is never used by the
    deterministic forward path), stored as a [HIDDEN, 1] column for the
    batch-on-lanes reduction.
    """
    k1, k2, k3, k4, k5, k6 = jax.random.split(key, 6)
    scale = 0.1
    w1t = scale * jax.random.normal(k1, (HIDDEN, STATE_DIM), jnp.float32)
    b1 = scale * jax.random.normal(k2, (HIDDEN, 1), jnp.float32)
    w2t = (scale * jax.random.normal(k3, (HIDDEN, HIDDEN), jnp.float32)).astype(jnp.bfloat16)
    b2 = scale * jax.random.normal(k4, (HIDDEN, 1), jnp.float32)
    w3_full = scale * jax.random.normal(k5, (2 * ACTION_DIM, HIDDEN), jnp.float32)
    b3_full = scale * jax.random.normal(k6, (2 * ACTION_DIM, 1), jnp.float32)
    w3m = jnp.transpose(w3_full[:ACTION_DIM, :])   # [HIDDEN, 1]
    b3m = b3_full[:ACTION_DIM, :]                  # [1, 1]
    return (w1t, b1, w2t, b2, w3m, b3m)


def agent_forward_ref(state, params):
    w1t, b1, w2t, b2, w3m, b3m = params
    h1 = jnp.maximum(state @ jnp.transpose(w1t) + jnp.transpose(b1), 0.0)
    h2 = jnp.maximum(h1 @ jnp.transpose(w2t.astype(jnp.float32)) + jnp.transpose(b2), 0.0)
    mean = h2 @ w3m + jnp.transpose(b3m)
    return jnp.tanh(mean)


if __name__ == "__main__":
    key = jax.random.PRNGKey(0)
    kp, ks = jax.random.split(key)
    params = init_actor_params(kp)

    # TODO(synk): the learning_steps==0 branch returns torch.rand(1)*2-1 (pure RNG, no
    # compute) and the stochastic rsample/log_prob path are not implemented; only the
    # post-warmup deterministic actor path is.
    # TODO(synk): for true single-step online inference (B ~ 1-64) the cost is
    # pallas_call dispatch + exposed weight DMA; a cross-call VMEM-resident-weight
    # (P10) scheme or plain XLA fusion would be the right tool there.

    # Small batch of pendulum states [cos(theta), sin(theta), theta_dot].
    B = 8
    state = jax.random.uniform(ks, (B, STATE_DIM), jnp.float32, minval=-1.0, maxval=1.0)
    action = agent_forward(state, params)
    jax.block_until_ready(action)
    ref = agent_forward_ref(state, params)
    assert action.shape == (B, ACTION_DIM)
    # bf16 MXU inputs (h1/w2) with f32 accumulation -> small rounding vs f32 reference.
    assert jnp.allclose(action, ref, atol=1e-2, rtol=1e-2)

    # Larger batch: exercises padding and the multi-tile (grid >= 2) path.
    B2 = 300
    state2 = jax.random.uniform(jax.random.PRNGKey(1), (B2, STATE_DIM), jnp.float32,
                                minval=-1.0, maxval=1.0)
    action2 = agent_forward(state2, params)
    jax.block_until_ready(action2)
    ref2 = agent_forward_ref(state2, params)
    assert action2.shape == (B2, ACTION_DIM)
    assert jnp.allclose(action2, ref2, atol=1e-2, rtol=1e-2)

    print("KERNEL_OK")
</pallas_src>

<mosaic_0001>
module attributes {stable_mosaic.version = 11 : i64} {
  func.func @agent_forward_kernel(%arg0: i32, %arg1: memref<3x128xf32, #tpu.memory_space<vmem>>, %arg2: memref<256x3xf32, #tpu.memory_space<vmem>>, %arg3: memref<256x1xf32, #tpu.memory_space<vmem>>, %arg4: memref<256x256xbf16, #tpu.memory_space<vmem>>, %arg5: memref<256x1xf32, #tpu.memory_space<vmem>>, %arg6: memref<256x1xf32, #tpu.memory_space<vmem>>, %arg7: memref<1x1xf32, #tpu.memory_space<vmem>>, %arg8: memref<1x128xf32, #tpu.memory_space<vmem>>) attributes {dimension_semantics = [#tpu.dimension_semantics<parallel>], iteration_bounds = array<i64: 1>, scalar_prefetch = 0 : i64, scratch_operands = 0 : i64, tpu.core_type = #tpu.core_type<tc>, window_params = [{transform_indices = @transform_0, window_bounds = array<i64: 3, 128>}, {pipeline_mode = #tpu.pipeline_mode<synchronous>, transform_indices = @transform_1, window_bounds = array<i64: 256, 3>}, {pipeline_mode = #tpu.pipeline_mode<synchronous>, transform_indices = @transform_2, window_bounds = array<i64: 256, 1>}, {pipeline_mode = #tpu.pipeline_mode<synchronous>, transform_indices = @transform_3, window_bounds = array<i64: 256, 256>}, {pipeline_mode = #tpu.pipeline_mode<synchronous>, transform_indices = @transform_4, window_bounds = array<i64: 256, 1>}, {pipeline_mode = #tpu.pipeline_mode<synchronous>, transform_indices = @transform_5, window_bounds = array<i64: 256, 1>}, {pipeline_mode = #tpu.pipeline_mode<synchronous>, transform_indices = @transform_6, window_bounds = array<i64: 1, 1>}, {transform_indices = @transform_7, window_bounds = array<i64: 1, 128>}]} {
    %c0 = arith.constant 0 : index
    %c0_0 = arith.constant 0 : index
    %0 = vector.load %arg1[%c0, %c0_0] : memref<3x128xf32, #tpu.memory_space<vmem>>, vector<3x128xf32>
    %c0_1 = arith.constant 0 : index
    %c0_2 = arith.constant 0 : index
    %1 = vector.load %arg2[%c0_1, %c0_2] : memref<256x3xf32, #tpu.memory_space<vmem>>, vector<256x3xf32>
    %2 = vector.extract_strided_slice %1 {offsets = [0, 0], sizes = [256, 1], strides = [1, 1]} : vector<256x3xf32> to vector<256x1xf32>
    %3 = vector.extract_strided_slice %0 {offsets = [0, 0], sizes = [1, 128], strides = [1, 1]} : vector<3x128xf32> to vector<1x128xf32>
    %4 = vector.broadcast %2 : vector<256x1xf32> to vector<256x128xf32>
    %5 = vector.broadcast %3 : vector<1x128xf32> to vector<256x128xf32>
    %6 = arith.mulf %4, %5 : vector<256x128xf32>
    %7 = vector.extract_strided_slice %1 {offsets = [0, 1], sizes = [256, 1], strides = [1, 1]} : vector<256x3xf32> to vector<256x1xf32>
    %8 = vector.extract_strided_slice %0 {offsets = [1, 0], sizes = [1, 128], strides = [1, 1]} : vector<3x128xf32> to vector<1x128xf32>
    %9 = vector.broadcast %7 : vector<256x1xf32> to vector<256x128xf32>
    %10 = vector.broadcast %8 : vector<1x128xf32> to vector<256x128xf32>
    %11 = arith.mulf %9, %10 : vector<256x128xf32>
    %12 = arith.addf %6, %11 : vector<256x128xf32>
    %13 = vector.extract_strided_slice %1 {offsets = [0, 2], sizes = [256, 1], strides = [1, 1]} : vector<256x3xf32> to vector<256x1xf32>
    %14 = vector.extract_strided_slice %0 {offsets = [2, 0], sizes = [1, 128], strides = [1, 1]} : vector<3x128xf32> to vector<1x128xf32>
    %15 = vector.broadcast %13 : vector<256x1xf32> to vector<256x128xf32>
    %16 = vector.broadcast %14 : vector<1x128xf32> to vector<256x128xf32>
    %17 = arith.mulf %15, %16 : vector<256x128xf32>
    %18 = arith.addf %12, %17 : vector<256x128xf32>
    %c0_3 = arith.constant 0 : index
    %c0_4 = arith.constant 0 : index
    %19 = vector.load %arg3[%c0_3, %c0_4] : memref<256x1xf32, #tpu.memory_space<vmem>>, vector<256x1xf32>
    %20 = vector.broadcast %19 : vector<256x1xf32> to vector<256x128xf32>
    %21 = arith.addf %18, %20 : vector<256x128xf32>
    %cst = arith.constant 0.000000e+00 : f32
    %22 = vector.broadcast %cst : f32 to vector<256x128xf32>
    %23 = arith.maximumf %21, %22 : vector<256x128xf32>
    %c0_5 = arith.constant 0 : index
    %c0_6 = arith.constant 0 : index
    %24 = vector.load %arg4[%c0_5, %c0_6] : memref<256x256xbf16, #tpu.memory_space<vmem>>, vector<256x256xbf16>
    %25 = arith.truncf %23 : vector<256x128xf32> to vector<256x128xbf16>
    %cst_7 = arith.constant dense<0.000000e+00> : vector<256x128xf32>
    %26 = tpu.matmul %24, %25, %cst_7 {dimension_numbers = #tpu.dot_dimension_numbers<[1], [0], [0], [1], [0, 0, 1, 1], [], []>} : vector<256x256xbf16>, vector<256x128xbf16>, vector<256x128xf32> -> vector<256x128xf32>
    %c0_8 = arith.constant 0 : index
    %c0_9 = arith.constant 0 : index
    %27 = vector.load %arg5[%c0_8, %c0_9] : memref<256x1xf32, #tpu.memory_space<vmem>>, vector<256x1xf32>
    %28 = vector.broadcast %27 : vector<256x1xf32> to vector<256x128xf32>
    %29 = arith.addf %26, %28 : vector<256x128xf32>
    %cst_10 = arith.constant 0.000000e+00 : f32
    %30 = vector.broadcast %cst_10 : f32 to vector<256x128xf32>
    %31 = arith.maximumf %29, %30 : vector<256x128xf32>
    %c0_11 = arith.constant 0 : index
    %c0_12 = arith.constant 0 : index
    %32 = vector.load %arg6[%c0_11, %c0_12] : memref<256x1xf32, #tpu.memory_space<vmem>>, vector<256x1xf32>
    %33 = vector.broadcast %32 : vector<256x1xf32> to vector<256x128xf32>
    %34 = arith.mulf %31, %33 : vector<256x128xf32>
    %cst_13 = arith.constant dense<0.000000e+00> : vector<128xf32>
    %35 = vector.multi_reduction <add>, %34, %cst_13 [0] : vector<256x128xf32> to vector<128xf32>
    %36 = vector.shape_cast %35 : vector<128xf32> to vector<1x128xf32>
    %c0_14 = arith.constant 0 : index
    %c0_15 = arith.constant 0 : index
    %37 = vector.load %arg7[%c0_14, %c0_15] : memref<1x1xf32, #tpu.memory_space<vmem>>, vector<1x1xf32>
    %38 = vector.broadcast %37 : vector<1x1xf32> to vector<1x128xf32>
    %39 = arith.addf %36, %38 : vector<1x128xf32>
    %40 = math.tanh %39 : vector<1x128xf32>
    %c0_16 = arith.constant 0 : index
    %c0_17 = arith.constant 0 : index
    %41 = vector.load %arg8[%c0_16, %c0_17] : memref<1x128xf32, #tpu.memory_space<vmem>>, vector<1x128xf32>
    tpu.vector_store %arg8[%c0_16, %c0_17], %40 {strides = array<i32>} : memref<1x128xf32, #tpu.memory_space<vmem>>, vector<1x128xf32>,
    return
  }
  func.func @transform_0(%arg0: i32) -> (i32, i32) {
    %c0_i32 = arith.constant 0 : i32
    %c0_i32_0 = arith.constant 0 : i32
    return %c0_i32, %arg0 : i32, i32
  }
  func.func @transform_1(%arg0: i32) -> (i32, i32) {
    %c0_i32 = arith.constant 0 : i32
    %c0_i32_0 = arith.constant 0 : i32
    %c0_i32_1 = arith.constant 0 : i32
    return %c0_i32, %c0_i32_0 : i32, i32
  }
  func.func @transform_2(%arg0: i32) -> (i32, i32) {
    %c0_i32 = arith.constant 0 : i32
    %c0_i32_0 = arith.constant 0 : i32
    %c0_i32_1 = arith.constant 0 : i32
    return %c0_i32, %c0_i32_0 : i32, i32
  }
  func.func @transform_3(%arg0: i32) -> (i32, i32) {
    %c0_i32 = arith.constant 0 : i32
    %c0_i32_0 = arith.constant 0 : i32
    %c0_i32_1 = arith.constant 0 : i32
    return %c0_i32, %c0_i32_0 : i32, i32
  }
  func.func @transform_4(%arg0: i32) -> (i32, i32) {
    %c0_i32 = arith.constant 0 : i32
    %c0_i32_0 = arith.constant 0 : i32
    %c0_i32_1 = arith.constant 0 : i32
    return %c0_i32, %c0_i32_0 : i32, i32
  }
  func.func @transform_5(%arg0: i32) -> (i32, i32) {
    %c0_i32 = arith.constant 0 : i32
    %c0_i32_0 = arith.constant 0 : i32
    %c0_i32_1 = arith.constant 0 : i32
    return %c0_i32, %c0_i32_0 : i32, i32
  }
  func.func @transform_6(%arg0: i32) -> (i32, i32) {
    %c0_i32 = arith.constant 0 : i32
    %c0_i32_0 = arith.constant 0 : i32
    %c0_i32_1 = arith.constant 0 : i32
    return %c0_i32, %c0_i32_0 : i32, i32
  }
  func.func @transform_7(%arg0: i32) -> (i32, i32) {
    %c0_i32 = arith.constant 0 : i32
    %c0_i32_0 = arith.constant 0 : i32
    return %c0_i32, %arg0 : i32, i32
  }
}

</mosaic_0001>

<bundles_post_ra>
// kernel: tpu_custom_call.1
= control target key start
LH: loop header
LB: loop body
LE: loop exit
PB: predicated region body
PF: predicated region fallthrough
CT: control target
= control target key end

     0   :  { %s3247_s0 = inlined_call_operand.vmem [shape: f32[3,128], index: 0, kind: input, shape index: {}]   ;;  %s3248_s1 = inlined_call_operand.vmem [shape: f32[256,3], index: 1, kind: input, shape index: {}]   ;;  %s3249_s2 = inlined_call_operand.vmem [shape: f32[256,1], index: 2, kind: input, shape index: {}]   ;;  %s3250_s3 = inlined_call_operand.vmem [shape: bf16[256,256], index: 3, kind: input, shape index: {}]   ;;  %s3251_s4 = inlined_call_operand.vmem [shape: f32[256,1], index: 4, kind: input, shape index: {}]   ;;  %s3252_s5 = inlined_call_operand.vmem [shape: f32[256,1], index: 5, kind: input, shape index: {}]   ;;  %s3253_s6 = inlined_call_operand.<no memory space> [shape: f32[1,1], index: 6, kind: input, shape index: {}]   ;;  %s3254_s7 = inlined_call_operand.hbm [shape: f32[1,128], index: 7, kind: output, shape index: {}]  }
   0x1   :  { %v12_v0 = vstv %s3253_s6 }
   0x2   :  { %13 = vst [vmem:[#allocation2] sm:$0x1] %v12_v0 }
   0x3   :  { %v2095_v1 = vld [vmem:[%s3248_s1 + $0x10] sm:$0xff]  ;;  %v2100_v2 = vld [vmem:[%s3248_s1] sm:$0xff]  ;;  %v2045_v3 = vmov 1   ;;  %v3255_v4 = vmov 0   ;;  %v2108_v5 = vld [vmem:[%s3248_s1 + $0x18] sm:$0xff] }
   0x4   :  { %1953 = vset.pattern.permute.xlu0 %v2045_v3  ;;  %1952 = vset.pattern.permute.xlu1 %v3255_v4  ;;  %v2115_v6 = vld [vmem:[%s3248_s1 + $0x28] sm:$0xff]  ;;  %v2122_v7 = vld [vmem:[%s3248_s1 + $0x38] sm:$0xff] }
   0x5   :  { %75 = vperm.xlu1 %1952, %v2095_v1   ;;  %260 = vperm.xlu0 %1953, %v2100_v2   ;;  %v2127_v8 = vld [vmem:[%s3248_s1 + $0x48] sm:$0xff]  ;;  %v2134_v9 = vld [vmem:[%s3248_s1 + $0x58] sm:$0xff] }
   0x9   :  { %80 = vperm.xlu1 %1952, %v2108_v5   ;;  %272 = vperm.xlu0 %1953, %v2108_v5  }
   0xd   :  { %90 = vperm.xlu1 %1952, %v2115_v6   ;;  %280 = vperm.xlu0 %1953, %v2115_v6  }
  0x11   :  { %100 = vperm.xlu1 %1952, %v2122_v7   ;;  %288 = vperm.xlu0 %1953, %v2122_v7  }
  0x15   :  { %110 = vperm.xlu1 %1952, %v2127_v8   ;;  %296 = vperm.xlu0 %1953, %v2127_v8  }
  0x16   :  { %14 = vsyncpa [#allocation4], 0  ;;  %v2143_v10 = vld [vmem:[%s3248_s1 + $0x68] sm:$0xff]  ;;  %v2150_v11 = vld [vmem:[%s3248_s1 + $0x78] sm:$0xff]  ;;  %v3257_v21 = vmov 2  }
  0x17   :  { %v2157_v12 = vld [vmem:[%s3248_s1 + $0x88] sm:$0xff]  ;;  %v2164_v13 = vld [vmem:[%s3248_s1 + $0x98] sm:$0xff]  ;;  %v35_v22 = vld [vmem:[%s3248_s1 + $0x20] sm:$0xff] }
  0x18   :  { %v52_v14 = vld [vmem:[%s3248_s1 + $0xa8] sm:$0xff]  ;;  %v54_v15 = vld [vmem:[%s3248_s1 + $0xb8] sm:$0xff]  ;;  %v37_v23 = vld [vmem:[%s3248_s1 + $0x30] sm:$0xff] }
  0x19   :  { %120 = vperm.xlu1 %1952, %v2134_v9   ;;  %304 = vperm.xlu0 %1953, %v2134_v9   ;;  %v56_v16 = vld [vmem:[%s3248_s1 + $0xc8] sm:$0xff]  ;;  %v58_v17 = vld [vmem:[%s3248_s1 + $0xd8] sm:$0xff]  ;;  %v39_v24 = vld [vmem:[%s3248_s1 + $0x40] sm:$0xff] }
  0x1a   :  { %v60_v18 = vld [vmem:[%s3248_s1 + $0xe8] sm:$0xff]  ;;  %v62_v19 = vld [vmem:[%s3248_s1 + $0xf8] sm:$0xff]  ;;  %v41_v25 = vld [vmem:[%s3248_s1 + $0x50] sm:$0xff] }
  0x1b   :  { %v32_v20 = vld [vmem:[%s3248_s1 + $0x8] sm:$0xff]  ;;  %v43_v26 = vld [vmem:[%s3248_s1 + $0x60] sm:$0xff]  ;;  %v45_v27 = vld [vmem:[%s3248_s1 + $0x70] sm:$0xff] }
  0x1c   :  { %v47_v28 = vld [vmem:[%s3248_s1 + $0x80] sm:$0xff]  ;;  %v49_v29 = vld [vmem:[%s3248_s1 + $0x90] sm:$0xff]  ;;  %v668_v60 = vld [vmem:[%s3249_s2 + $0x88] sm:$0xff] }
  0x1d   :  { %130 = vperm.xlu1 %1952, %v2143_v10   ;;  %312 = vperm.xlu0 %1953, %v2143_v10   ;;  %v2218_v30 = vld [vmem:[%s3248_s1 + $0xa0] sm:$0xff]  ;;  %v2224_v31 = vld [vmem:[%s3248_s1 + $0xb0] sm:$0xff] }
  0x1e   :  { %v2230_v32 = vld [vmem:[%s3248_s1 + $0xc0] sm:$0xff]  ;;  %v2236_v33 = vld [vmem:[%s3248_s1 + $0xd0] sm:$0xff] }
  0x1f   :  { %v2242_v34 = vld [vmem:[%s3248_s1 + $0xe0] sm:$0xff]  ;;  %v2248_v35 = vld [vmem:[%s3248_s1 + $0xf0] sm:$0xff] }
  0x20   :  { %v651_v63 = vld [vmem:[%s3249_s2] sm:$0xff] }
  0x21   :  { %140 = vperm.xlu1 %1952, %v2150_v11   ;;  %320 = vperm.xlu0 %1953, %v2150_v11  }
  0x25   :  { %150 = vperm.xlu1 %1952, %v2157_v12   ;;  %328 = vperm.xlu0 %1953, %v2157_v12  }
  0x29   :  { %160 = vperm.xlu1 %1952, %v2164_v13   ;;  %336 = vperm.xlu0 %1953, %v2164_v13  }
  0x2d   :  { %170 = vperm.xlu1 %1952, %v52_v14   ;;  %344 = vperm.xlu0 %1953, %v52_v14  }
  0x31   :  { %180 = vperm.xlu1 %1952, %v54_v15   ;;  %352 = vperm.xlu0 %1953, %v54_v15  }
  0x35   :  { %190 = vperm.xlu1 %1952, %v56_v16   ;;  %360 = vperm.xlu0 %1953, %v56_v16  }
  0x39   :  { %200 = vperm.xlu1 %1952, %v58_v17   ;;  %368 = vperm.xlu0 %1953, %v58_v17  }
  0x3d   :  { %210 = vperm.xlu1 %1952, %v60_v18   ;;  %376 = vperm.xlu0 %1953, %v60_v18  }
  0x41   :  { %220 = vperm.xlu1 %1952, %v62_v19   ;;  %384 = vperm.xlu0 %1953, %v62_v19  }
  0x45   :  { %1954 = vset.pattern.permute.xlu1 %v2045_v3  ;;  %1956 = vset.pattern.permute.xlu0 %v3257_v21 }
  0x46   :  { %264 = vperm.xlu1 %1954, %v32_v20   ;;  %460 = vperm.xlu0 %1956, %v32_v20  }
  0x4a   :  { %268 = vperm.xlu1 %1954, %v2095_v1   ;;  %472 = vperm.xlu0 %1956, %v35_v22  }
  0x4e   :  { %276 = vperm.xlu1 %1954, %v35_v22   ;;  %480 = vperm.xlu0 %1956, %v37_v23  }
  0x52   :  { %284 = vperm.xlu1 %1954, %v37_v23   ;;  %488 = vperm.xlu0 %1956, %v39_v24  }
  0x56   :  { %292 = vperm.xlu1 %1954, %v39_v24   ;;  %496 = vperm.xlu0 %1956, %v41_v25  }
  0x5a   :  { %300 = vperm.xlu1 %1954, %v41_v25   ;;  %504 = vperm.xlu0 %1956, %v43_v26  }
  0x5e   :  { %308 = vperm.xlu1 %1954, %v43_v26   ;;  %512 = vperm.xlu0 %1956, %v45_v27  }
  0x62   :  { %316 = vperm.xlu1 %1954, %v45_v27   ;;  %520 = vperm.xlu0 %1956, %v47_v28  }
  0x66   :  { %324 = vperm.xlu1 %1954, %v47_v28   ;;  %528 = vperm.xlu0 %1956, %v49_v29  }
  0x6a   :  { %332 = vperm.xlu1 %1954, %v49_v29   ;;  %540 = vperm.xlu0 %1956, %v52_v14   ;;  %v653_v14 = vld [vmem:[%s3249_s2 + $0x10] sm:$0xff] }
  0x6e   :  { %340 = vperm.xlu1 %1954, %v2218_v30   ;;  %548 = vperm.xlu0 %1956, %v54_v15  }
  0x72   :  { %348 = vperm.xlu1 %1954, %v2224_v31   ;;  %556 = vperm.xlu0 %1956, %v56_v16  }
  0x76   :  { %356 = vperm.xlu1 %1954, %v2230_v32   ;;  %564 = vperm.xlu0 %1956, %v58_v17   ;;  %v655_v17 = vld [vmem:[%s3249_s2 + $0x20] sm:$0xff] }
  0x7a   :  { %364 = vperm.xlu1 %1954, %v2236_v33   ;;  %572 = vperm.xlu0 %1956, %v60_v18  }
  0x7e   :  { %372 = vperm.xlu1 %1954, %v2242_v34   ;;  %580 = vperm.xlu0 %1956, %v62_v19  }
  0x82   :  { %380 = vperm.xlu1 %1954, %v2248_v35   ;;  %1969 = vset.pattern.permute.xlu0 %v3255_v4 }
  0x83   :  { %65 = vperm.xlu0 %1969, %v2100_v2  }
  0x84   :  { %v2253_v36 = vpop.permute.xlu1 %75  ;;  %v2255_v37 = vpop.permute.xlu0 %260 }
  0x86   :  { %1955 = vset.pattern.permute.xlu1 %v3257_v21 }
  0x87   :  { %456 = vperm.xlu1 %1955, %v2100_v2   ;;  %70 = vperm.xlu0 %1969, %v32_v20   ;;  %v657_v20 = vld [vmem:[%s3249_s2 + $0x30] sm:$0xff] }
  0x88   :  { %v2259_v38 = vpop.permute.xlu1 %80  ;;  %v2261_v39 = vpop.permute.xlu0 %272 }
  0x8b   :  { %464 = vperm.xlu1 %1955, %v2095_v1   ;;  %85 = vperm.xlu0 %1969, %v35_v22  }
  0x8c   :  { %v2264_v40 = vpop.permute.xlu1 %90  ;;  %v2266_v41 = vpop.permute.xlu0 %280 }
  0x8f   :  { %468 = vperm.xlu1 %1955, %v2108_v5   ;;  %95 = vperm.xlu0 %1969, %v37_v23   ;;  %v669_v5 = vld [vmem:[%s3249_s2 + $0x90] sm:$0xff] }
  0x90   :  { %v2269_v42 = vpop.permute.xlu1 %100  ;;  %v2271_v43 = vpop.permute.xlu0 %288 }
  0x93   :  { %476 = vperm.xlu1 %1955, %v2115_v6   ;;  %105 = vperm.xlu0 %1969, %v39_v24   ;;  %v671_v24 = vld [vmem:[%s3249_s2 + $0xa0] sm:$0xff] }
  0x94   :  { %v2274_v44 = vpop.permute.xlu1 %110  ;;  %v2276_v45 = vpop.permute.xlu0 %296 }
  0x95   :  { %3260 = vst [vmem:[#allocation6_spill] sm:$0xff] %v2274_v44  ;;  %3261 = vst [vmem:[#allocation7_spill] sm:$0xff] %v2276_v45 }
  0x97   :  { %484 = vperm.xlu1 %1955, %v2122_v7   ;;  %115 = vperm.xlu0 %1969, %v41_v25   ;;  %v659_v25 = vld [vmem:[%s3249_s2 + $0x40] sm:$0xff] }
  0x98   :  { %v2279_v46 = vpop.permute.xlu1 %120  ;;  %v2281_v47 = vpop.permute.xlu0 %304 }
  0x99   :  { %3262 = vst [vmem:[#allocation8_spill] sm:$0xff] %v2279_v46  ;;  %3263 = vst [vmem:[#allocation9_spill] sm:$0xff] %v2281_v47 }
  0x9b   :  { %492 = vperm.xlu1 %1955, %v2127_v8   ;;  %125 = vperm.xlu0 %1969, %v43_v26   ;;  %v667_v8 = vld [vmem:[%s3249_s2 + $0x80] sm:$0xff] }
  0x9c   :  { %v2284_v48 = vpop.permute.xlu1 %130  ;;  %v2286_v49 = vpop.permute.xlu0 %312 }
  0x9d   :  { %3264 = vst [vmem:[#allocation10_spill] sm:$0xff] %v2284_v48  ;;  %3265 = vst [vmem:[#allocation11_spill] sm:$0xff] %v2286_v49 }
  0x9f   :  { %500 = vperm.xlu1 %1955, %v2134_v9   ;;  %135 = vperm.xlu0 %1969, %v45_v27   ;;  %v670_v9 = vld [vmem:[%s3249_s2 + $0x98] sm:$0xff] }
  0xa0   :  { %v2289_v50 = vpop.permute.xlu1 %140  ;;  %v2291_v51 = vpop.permute.xlu0 %320 }
  0xa1   :  { %3266 = vst [vmem:[#allocation12_spill] sm:$0xff] %v2289_v50  ;;  %3267 = vst [vmem:[#allocation13_spill] sm:$0xff] %v2291_v51  ;;  %v676_v51 = vld [vmem:[%s3249_s2 + $0xc8] sm:$0xff]  ;;  %v966_v50 = vld [vmem:[%s3251_s4 + $0x58] sm:$0xff] }
  0xa3   :  { %508 = vperm.xlu1 %1955, %v2143_v10   ;;  %145 = vperm.xlu0 %1969, %v47_v28   ;;  %v652_v10 = vld [vmem:[%s3249_s2 + $0x8] sm:$0xff] }
  0xa4   :  { %v2294_v52 = vpop.permute.xlu1 %150  ;;  %v2296_v53 = vpop.permute.xlu0 %328  ;;  %v672_v28 = vld [vmem:[%s3249_s2 + $0xa8] sm:$0xff] }
  0xa7   :  { %516 = vperm.xlu1 %1955, %v2150_v11   ;;  %155 = vperm.xlu0 %1969, %v49_v29   ;;  %v661_v29 = vld [vmem:[%s3249_s2 + $0x50] sm:$0xff] }
  0xa8   :  { %v2299_v54 = vpop.permute.xlu1 %160  ;;  %v2301_v55 = vpop.permute.xlu0 %336 }
  0xab   :  { %524 = vperm.xlu1 %1955, %v2157_v12   ;;  %165 = vperm.xlu0 %1969, %v2218_v30  }
  0xac   :  { %v2305_v56 = vpop.permute.xlu1 %170  ;;  %v2307_v57 = vpop.permute.xlu0 %344 }
  0xaf   :  { %532 = vperm.xlu1 %1955, %v2164_v13   ;;  %175 = vperm.xlu0 %1969, %v2224_v31   ;;  %v654_v13 = vld [vmem:[%s3249_s2 + $0x18] sm:$0xff] }
  0xb0   :  { %v2311_v58 = vpop.permute.xlu1 %180  ;;  %v2313_v59 = vpop.permute.xlu0 %352 }
  0xb3   :  { %1957 = vset.pattern.permute.xlu1 %v3255_v4  ;;  %185 = vperm.xlu0 %1969, %v2230_v32  }
  0xb4   :  { %v2320_v61 = vpop.permute.xlu1 %190  ;;  %770 = vperm.xlu1 %1957, %v668_v60   ;;  %v2322_v62 = vpop.permute.xlu0 %360  ;;  %v656_v60 = vld [vmem:[%s3249_s2 + $0x28] sm:$0xff] }
  0xb5   :  { %3268 = vst [vmem:[#allocation14_spill] sm:$0xff] %v2320_v61  ;;  %3269 = vst [vmem:[#allocation15_spill] sm:$0xff] %v2322_v62 }
  0xb7   :  { %195 = vperm.xlu0 %1969, %v2236_v33  }
  0xb8   :  { %v2328_v0 = vpop.permute.xlu1 %200  ;;  %685 = vperm.xlu1 %1957, %v651_v63   ;;  %v2330_v1 = vpop.permute.xlu0 %368  ;;  %v663_v63 = vld [vmem:[%s3249_s2 + $0x60] sm:$0xff] }
  0xb9   :  { %3270 = vst [vmem:[#allocation16_spill] sm:$0xff] %v2328_v0  ;;  %3271 = vst [vmem:[#allocation17_spill] sm:$0xff] %v2330_v1  ;;  %v1976_v0 = vld [vmem:[%s3250_s3 + $0x84] ss:$8 sps:$4 sm:$0xff]  }
  0xba   :  { %1403 = vmatprep.mubr.bf16.mxu1 %v1976_v0 }
  0xbb   :  { %205 = vperm.xlu0 %1969, %v2242_v34  }
  0xbc   :  { %v2333_v2 = vpop.permute.xlu1 %210  ;;  %1958 = vset.pattern.permute.xlu1 %v3257_v21  ;;  %v2336_v3 = vpop.permute.xlu0 %376 }
  0xbd   :  { %3272 = vst [vmem:[#allocation18_spill] sm:$0xff] %v2333_v2  ;;  %3273 = vst [vmem:[#allocation19_spill] sm:$0xff] %v2336_v3  ;;  %536 = vperm.xlu1 %1958, %v2218_v30  }
  0xbf   :  { %215 = vperm.xlu0 %1969, %v2248_v35  }
  0xc0   :  { %v2343_v6 = vpop.permute.xlu1 %220  ;;  %v2345_v7 = vpop.permute.xlu0 %384 }
  0xc1   :  { %3274 = vst [vmem:[#allocation20_spill] sm:$0xff] %v2343_v6  ;;  %3275 = vst [vmem:[#allocation21_spill] sm:$0xff] %v2345_v7  ;;  %1959 = vset.pattern.permute.xlu1 %v3255_v4  ;;  %v968_v7 = vld [vmem:[%s3251_s4 + $0x68] sm:$0xff]  ;;  %v3293_v6 = vmov 2  }
  0xc2   :  { %775 = vperm.xlu1 %1959, %v669_v5  }
  0xc3   :  { %765 = vperm.xlu0 %1969, %v667_v8  }
  0xc5   :  { %v2357_v11 = vpop.permute.xlu1 %264  ;;  %v2359_v12 = vpop.permute.xlu0 %460 }
  0xc6   :  { %780 = vperm.xlu1 %1959, %v670_v9   ;;  %v682_v9 = vld [vmem:[%s3249_s2 + $0xf8] sm:$0xff] }
  0xc7   :  { %690 = vperm.xlu0 %1969, %v652_v10  }
  0xc9   :  { %v2367_v15 = vpop.permute.xlu1 %268  ;;  %v2369_v16 = vpop.permute.xlu0 %472 }
  0xca   :  { %700 = vperm.xlu1 %1959, %v654_v13  }
  0xcb   :  { %695 = vperm.xlu0 %1969, %v653_v14   ;;  %v673_v14 = vld [vmem:[%s3249_s2 + $0xb0] sm:$0xff] }
  0xcd   :  { %v2374_v18 = vpop.permute.xlu1 %276  ;;  %v2376_v19 = vpop.permute.xlu0 %480 }
  0xce   :  { %1960 = vset.pattern.permute.xlu1 %v3257_v21 }
  0xcf   :  { %544 = vperm.xlu1 %1960, %v2224_v31   ;;  %705 = vperm.xlu0 %1969, %v655_v17   ;;  %v666_v17 = vld [vmem:[%s3249_s2 + $0x78] sm:$0xff] }
  0xd1   :  { %v2383_v22 = vpop.permute.xlu1 %284  ;;  %v2385_v23 = vpop.permute.xlu0 %488 }
  0xd2   :  { %3276 = vst [vmem:[#allocation22_spill] sm:$0xff] %v2385_v23 }
  0xd3   :  { %1961 = vset.pattern.permute.xlu1 %v3255_v4  ;;  %715 = vperm.xlu0 %1969, %v657_v20  }
  0xd4   :  { %785 = vperm.xlu1 %1961, %v671_v24  }
  0xd5   :  { %v2394_v26 = vpop.permute.xlu1 %292  ;;  %v2396_v27 = vpop.permute.xlu0 %496 }
  0xd6   :  { %3277 = vst [vmem:[#allocation23_spill] sm:$0xff] %v2394_v26  ;;  %3278 = vst [vmem:[#allocation24_spill] sm:$0xff] %v2396_v27 }
  0xd7   :  { %725 = vperm.xlu0 %1969, %v659_v25   ;;  %v956_v25 = vld [vmem:[%s3251_s4 + $0x8] sm:$0xff] }
  0xd8   :  { %790 = vperm.xlu1 %1961, %v672_v28  }
  0xd9   :  { %v2404_v30 = vpop.permute.xlu1 %300  ;;  %v2406_v31 = vpop.permute.xlu0 %504 }
  0xda   :  { %3279 = vst [vmem:[#allocation25_spill] sm:$0xff] %v2404_v30  ;;  %3280 = vst [vmem:[#allocation26_spill] sm:$0xff] %v2406_v31  ;;  %v660_v31 = vld [vmem:[%s3249_s2 + $0x48] sm:$0xff]  ;;  %v223_v30 = vlaneseq }
  0xdb   :  { %735 = vperm.xlu0 %1969, %v661_v29  }
  0xdc   :  { %710 = vperm.xlu1 %1961, %v656_v60   ;;  %v658_v60 = vld [vmem:[%s3249_s2 + $0x38] sm:$0xff] }
  0xdd   :  { %v2414_v5 = vpop.permute.xlu1 %308  ;;  %v2416_v8 = vpop.permute.xlu0 %512 }
  0xde   :  { %3281 = vst [vmem:[#allocation27_spill] sm:$0xff] %v2414_v5  ;;  %3282 = vst [vmem:[#allocation28_spill] sm:$0xff] %v2416_v8 }
  0xdf   :  { %745 = vperm.xlu0 %1969, %v663_v63   ;;  %v958_v63 = vld [vmem:[%s3251_s4 + $0x18] sm:$0xff] }
  0xe0   :  { %1962 = vset.pattern.permute.xlu1 %v3257_v21 }
  0xe1   :  { %v2422_v10 = vpop.permute.xlu1 %316  ;;  %552 = vperm.xlu1 %1962, %v2230_v32   ;;  %v2425_v13 = vpop.permute.xlu0 %520  ;;  %v674_v32 = vld [vmem:[%s3249_s2 + $0xb8] sm:$0xff] }
  0xe2   :  { %3283 = vst [vmem:[#allocation29_spill] sm:$0xff] %v2422_v10  ;;  %v3287_v10 = vmov 0  }
  0xe3   :  { %840 = vperm.xlu0 %1969, %v682_v9  }
  0xe5   :  { %v2433_v20 = vpop.permute.xlu1 %324  ;;  %1963 = vset.pattern.permute.xlu1 %v3255_v4  ;;  %v2436_v24 = vpop.permute.xlu0 %528  ;;  %v962_v4 = vld [vmem:[%s3251_s4 + $0x38] sm:$0xff] }
  0xe6   :  { %795 = vperm.xlu1 %1963, %v673_v14  }
  0xe7   :  { %760 = vperm.xlu0 %1969, %v666_v17   ;;  %v960_v17 = vld [vmem:[%s3251_s4 + $0x28] sm:$0xff] }
  0xe9   :  { %v2444_v28 = vpop.permute.xlu1 %332  ;;  %v2446_v29 = vpop.permute.xlu0 %540 }
  0xea   :  { %800 = vperm.xlu1 %1963, %v674_v32  }
  0xeb   :  { %994 = vperm.xlu0 %1969, %v956_v25  }
  0xed   :  { %v2454_v9 = vpop.permute.xlu1 %340  ;;  %v2456_v14 = vpop.permute.xlu0 %548 }
  0xee   :  { %720 = vperm.xlu1 %1963, %v658_v60  }
  0xef   :  { %1004 = vperm.xlu0 %1969, %v958_v63   ;;  %v675_v63 = vld [vmem:[%s3249_s2 + $0xc0] sm:$0xff] }
  0xf1   :  { %v2461_v32 = vpop.permute.xlu1 %348  ;;  %v2463_v25 = vpop.permute.xlu0 %556 }
  0xf2   :  { %3284 = vst [vmem:[#allocation30_spill] sm:$0xff] %v2463_v25  ;;  %1964 = vset.pattern.permute.xlu1 %v3257_v21 }
  0xf3   :  { %560 = vperm.xlu1 %1964, %v2236_v33   ;;  %1014 = vperm.xlu0 %1969, %v960_v17   ;;  %v964_v33 = vld [vmem:[%s3251_s4 + $0x48] sm:$0xff] }
  0xf5   :  { %v2470_v8 = vpop.permute.xlu1 %356  ;;  %v2472_v60 = vpop.permute.xlu0 %564 }
  0xf6   :  { %3285 = vst [vmem:[#allocation31_spill] sm:$0xff] %v2470_v8  ;;  %3286 = vst [vmem:[#allocation32_spill] sm:$0xff] %v2472_v60  ;;  %v1514_v8 = vld [vmem:[%s3252_s5 + $0x70] sm:$0xff] }
  0xf7   :  { %1965 = vset.pattern.permute.xlu1 %v3287_v10  ;;  %1024 = vperm.xlu0 %1969, %v962_v4  }
  0xf8   :  { %805 = vperm.xlu1 %1965, %v675_v63  }
  0xf9   :  { %v2481_v17 = vpop.permute.xlu1 %364  ;;  %v2483_v21 = vpop.permute.xlu0 %572 }
  0xfa   :  { %3288 = vst [vmem:[#allocation33_spill] sm:$0xff] %v2481_v17  ;;  %3289 = vst [vmem:[#allocation34_spill] sm:$0xff] %v2483_v21  ;;  %v2607_v17 = vshrl.u32 %v223_v30, 7  ;;  %v1973_v30 = vld [vmem:[%s3250_s3 + $0x4] ss:$8 sps:$4 sm:$0xff]  }
  0xfb   :  { %1034 = vperm.xlu0 %1969, %v964_v33   ;;  %1339 = vmatprep.mubr.bf16.mxu0 %v1973_v30 }
  0xfc   :  { %810 = vperm.xlu1 %1965, %v676_v51   ;;  %3302 = vst [vmem:[#allocation46_spill] sm:$0xff] %v2607_v17  ;;  %v585_v45 = vsub.s32 2, %v2607_v17 }
  0xfd   :  { %v2491_v4 = vpop.permute.xlu1 %372  ;;  %v2493_v63 = vpop.permute.xlu0 %580 }
  0xfe   :  { %3290 = vst [vmem:[#allocation35_spill] sm:$0xff] %v2491_v4  ;;  %3291 = vst [vmem:[#allocation36_spill] sm:$0xff] %v2493_v63  ;;  %v970_v63 = vld [vmem:[%s3251_s4 + $0x78] sm:$0xff] }
  0xff   :  { %1044 = vperm.xlu0 %1969, %v966_v50  }
 0x100   :  { %730 = vperm.xlu1 %1965, %v660_v31   ;;  %v677_v31 = vld [vmem:[%s3249_s2 + $0xd0] sm:$0xff] }
 0x101   :  { %v2501_v33 = vpop.permute.xlu1 %380 }
 0x102   :  { %3292 = vst [vmem:[#allocation37_spill] sm:$0xff] %v2501_v33  ;;  %v2503_v51 = vpop.permute.xlu0 %65 }
 0x103   :  { %1054 = vperm.xlu0 %1969, %v968_v7   ;;  %v972_v7 = vld [vmem:[%s3251_s4 + $0x88] sm:$0xff] }
 0x104   :  { %1966 = vset.pattern.permute.xlu1 %v3293_v6 }
 0x105   :  { %568 = vperm.xlu1 %1966, %v2242_v34   ;;  %v678_v34 = vld [vmem:[%s3249_s2 + $0xd8] sm:$0xff] }
 0x106   :  { %v2510_v49 = vpop.permute.xlu1 %456  ;;  %v2512_v50 = vpop.permute.xlu0 %70 }
 0x107   :  { %1064 = vperm.xlu0 %1969, %v970_v63   ;;  %v974_v63 = vld [vmem:[%s3251_s4 + $0x98] sm:$0xff] }
 0x109   :  { %1967 = vset.pattern.permute.xlu1 %v3287_v10 }
 0x10a   :  { %815 = vperm.xlu1 %1967, %v677_v31   ;;  %v2521_v33 = vpop.permute.xlu1 %464  ;;  %v2523_v48 = vpop.permute.xlu0 %85  ;;  %v662_v31 = vld [vmem:[%s3249_s2 + $0x58] sm:$0xff] }
 0x10b   :  { %1074 = vperm.xlu0 %1969, %v972_v7   ;;  %v976_v7 = vld [vmem:[%s3251_s4 + $0xa8] sm:$0xff] }
 0x10e   :  { %820 = vperm.xlu1 %1967, %v678_v34   ;;  %v2531_v21 = vpop.permute.xlu1 %468  ;;  %v2533_v5 = vpop.permute.xlu0 %95  ;;  %v978_v34 = vld [vmem:[%s3251_s4 + $0xb8] sm:$0xff] }
 0x10f   :  { %1084 = vperm.xlu0 %1969, %v974_v63  }
 0x112   :  { %740 = vperm.xlu1 %1967, %v662_v31   ;;  %v2541_v4 = vpop.permute.xlu1 %476  ;;  %v2543_v3 = vpop.permute.xlu0 %105  ;;  %v980_v31 = vld [vmem:[%s3251_s4 + $0xc8] sm:$0xff] }
 0x113   :  { %3294 = vst [vmem:[#allocation38_spill] sm:$0xff] %v2543_v3  ;;  %1094 = vperm.xlu0 %1969, %v976_v7   ;;  %v679_v7 = vld [vmem:[%s3249_s2 + $0xe0] sm:$0xff] }
 0x116   :  { %1968 = vset.pattern.permute.xlu1 %v3293_v6  ;;  %v2549_v63 = vpop.permute.xlu1 %484  ;;  %v2551_v2 = vpop.permute.xlu0 %115  ;;  %v680_v6 = vld [vmem:[%s3249_s2 + $0xe8] sm:$0xff] }
 0x117   :  { %3295 = vst [vmem:[#allocation39_spill] sm:$0xff] %v2551_v2  ;;  %576 = vperm.xlu1 %1968, %v2248_v35   ;;  %1104 = vperm.xlu0 %1969, %v978_v34   ;;  %v1500_v35 = vld [vmem:[%s3252_s5] sm:$0xff] }
 0x11a   :  { %v2560_v27 = vpop.permute.xlu1 %492  ;;  %v2562_v47 = vpop.permute.xlu0 %125 }
 0x11b   :  { %3296 = vst [vmem:[#allocation40_spill] sm:$0xff] %v2560_v27  ;;  %3297 = vst [vmem:[#allocation41_spill] sm:$0xff] %v2562_v47  ;;  %1970 = vset.pattern.permute.xlu1 %v3287_v10  ;;  %1114 = vperm.xlu0 %1969, %v980_v31   ;;  %v1502_v10 = vld [vmem:[%s3252_s5 + $0x10] sm:$0xff]  ;;  %v664_v31 = vld [vmem:[%s3249_s2 + $0x68] sm:$0xff]  ;;  %v389_v27 = vsub.s32 1, %v2607_v17 }
 0x11c   :  { %825 = vperm.xlu1 %1970, %v679_v7  }
 0x11e   :  { %v2571_v34 = vpop.permute.xlu1 %500  ;;  %v2573_v46 = vpop.permute.xlu0 %135 }
 0x11f   :  { %3298 = vst [vmem:[#allocation42_spill] sm:$0xff] %v2571_v34  ;;  %3299 = vst [vmem:[#allocation43_spill] sm:$0xff] %v2573_v46  ;;  %1534 = vperm.xlu0 %1969, %v1500_v35   ;;  %v1504_v34 = vld [vmem:[%s3252_s5 + $0x20] sm:$0xff]  ;;  %v681_v35 = vld [vmem:[%s3249_s2 + $0xf0] sm:$0xff] }
 0x120   :  { %830 = vperm.xlu1 %1970, %v680_v6  }
 0x122   :  { %v2581_v7 = vpop.permute.xlu1 %508  ;;  %v146_v47 = vpop.permute.xlu0 %145 }
 0x123   :  { %3300 = vst [vmem:[#allocation44_spill] sm:$0xff] %v2581_v7  ;;  %1544 = vperm.xlu0 %1969, %v1502_v10   ;;  %v1506_v7 = vld [vmem:[%s3252_s5 + $0x30] sm:$0xff] }
 0x124   :  { %750 = vperm.xlu1 %1970, %v664_v31   ;;  %v665_v10 = vld [vmem:[%s3249_s2 + $0x70] sm:$0xff] }
 0x126   :  { %v2589_v6 = vpop.permute.xlu1 %516  ;;  %v156_v46 = vpop.permute.xlu0 %155 }
 0x127   :  { %3301 = vst [vmem:[#allocation45_spill] sm:$0xff] %v2589_v6  ;;  %1554 = vperm.xlu0 %1969, %v1504_v34   ;;  %v1508_v6 = vld [vmem:[%s3252_s5 + $0x40] sm:$0xff] }
 0x128   :  { %835 = vperm.xlu1 %1970, %v681_v35   ;;  %v955_v34 = vld [vmem:[%s3251_s4] sm:$0xff] }
 0x12a   :  { %v525_v31 = vpop.permute.xlu1 %524  ;;  %v2597_v60 = vpop.permute.xlu0 %165 }
 0x12b   :  { %1564 = vperm.xlu0 %1969, %v1506_v7   ;;  %v1510_v7 = vld [vmem:[%s3252_s5 + $0x50] sm:$0xff] }
 0x12c   :  { %755 = vperm.xlu1 %1970, %v665_v10   ;;  %v957_v10 = vld [vmem:[%s3251_s4 + $0x10] sm:$0xff] }
 0x12e   :  { %v533_v35 = vpop.permute.xlu1 %532  ;;  %v2605_v2 = vpop.permute.xlu0 %175 }
 0x12f   :  { %1574 = vperm.xlu0 %1969, %v1508_v6   ;;  %v30_v6 = vld [vmem:[%s3247_s0] sm:$0x7] }
 0x130   :  { %989 = vperm.xlu1 %1970, %v955_v34   ;;  %v1512_v34 = vld [vmem:[%s3252_s5 + $0x60] sm:$0xff]  ;;  %v2641_v26 = vrot.slane %v30_v6, %v389_v27  ;;  %v2650_v0 = vrot.slane %v30_v6, %v585_v45  ;;  %v961_v27 = vld [vmem:[%s3251_s4 + $0x30] sm:$0xff] }
 0x131   :  { %v1516_v45 = vld [vmem:[%s3252_s5 + $0x80] sm:$0xff] }
 0x132   :  { %v2615_v1 = vpop.permute.xlu0 %185  ;;  %v408_v30 = vmul.f32 %v2641_v26, %v2296_v53 }
 0x133   :  { %v771_v23 = vpop.permute.xlu1 %770  ;;  %1584 = vperm.xlu0 %1969, %v1510_v7   ;;  %v959_v7 = vld [vmem:[%s3251_s4 + $0x20] sm:$0xff] }
 0x134   :  { %999 = vperm.xlu1 %1970, %v957_v10   ;;  %v3304_v10 = vsub.s32 0, %v2607_v17  ;;  %v604_v17 = vmul.f32 %v2650_v0, %v525_v31 }
 0x136   :  { %v2635_v44 = vpop.permute.xlu0 %195  ;;  %v2639_v25 = vrot.slane %v30_v6, %v3304_v10 }
 0x137   :  { %3303 = vst [vmem:[#allocation47_spill] sm:$0xff] %v2635_v44  ;;  %v686_v3 = vpop.permute.xlu1 %685  ;;  %1594 = vperm.xlu0 %1969, %v1512_v34  }
 0x138   :  { %1009 = vperm.xlu1 %1970, %v959_v7   ;;  %v244_v62 = vmul.f32 %v2639_v25, %v2294_v52  ;;  %v243_v10 = vmul.f32 %v2639_v25, %v146_v47  ;;  %v407_v7 = vmul.f32 %v2641_v26, %v2433_v20  ;;  %v245_v52 = vmul.f32 %v2639_v25, %v156_v46 }
 0x139   :  { %v227_v6 = vmul.f32 %v2639_v25, %v2503_v51  ;;  %v391_v46 = vmul.f32 %v2641_v26, %v2255_v37  ;;  %v246_v31 = vmul.f32 %v2639_v25, %v2299_v54  ;;  %v409_v51 = vmul.f32 %v2641_v26, %v2444_v28  ;;  %v1518_v28 = vld [vmem:[%s3252_s5 + $0x90] sm:$0xff] }
 0x13a   :  { %v2656_v34 = vpop.permute.xlu0 %205  ;;  %v440_v47 = vadd.f32 %v408_v30, %v244_v62  ;;  %v439_v20 = vadd.f32 %v407_v7, %v243_v10  ;;  %v410_v62 = vmul.f32 %v2641_v26, %v2301_v55  ;;  %v603_v10 = vmul.f32 %v2650_v0, %v2425_v13 }
 0x13b   :  { %3305 = vst [vmem:[#allocation48_spill] sm:$0xff] %v2656_v34  ;;  %1604 = vperm.xlu0 %1969, %v1514_v8   ;;  %v228_v34 = vmul.f32 %v2639_v25, %v2512_v50  ;;  %v963_v8 = vld [vmem:[%s3251_s4 + $0x40] sm:$0xff]  ;;  %v392_v50 = vmul.f32 %v2641_v26, %v2357_v11  ;;  %v587_v37 = vmul.f32 %v2650_v0, %v2510_v49  ;;  %v965_v49 = vld [vmem:[%s3251_s4 + $0x50] sm:$0xff] }
 0x13c   :  { %1019 = vperm.xlu1 %1970, %v961_v27   ;;  %v2662_v53 = vpop.permute.xlu1 %536  ;;  %v636_v27 = vadd.f32 %v604_v17, %v440_v47  ;;  %v588_v54 = vmul.f32 %v2650_v0, %v2359_v12  ;;  %v441_v55 = vadd.f32 %v409_v51, %v245_v52  ;;  %v606_v7 = vmul.f32 %v2650_v0, %v533_v35 }
 0x13d   :  { %v423_v11 = vadd.f32 %v391_v46, %v227_v6  ;;  %v635_v61 = vadd.f32 %v603_v10, %v439_v20  ;;  %v230_v12 = vmul.f32 %v2639_v25, %v2259_v38  ;;  %v394_v17 = vmul.f32 %v2641_v26, %v2261_v39 }
 0x13e   :  { %v2682_v30 = vpop.permute.xlu0 %215  ;;  %v860_v44 = vadd.f32 %v771_v23, %v636_v27  ;;  %v442_v35 = vadd.f32 %v410_v62, %v246_v31  ;;  %v605_v52 = vmul.f32 %v2650_v0, %v2436_v24  ;;  %v229_v23 = vmul.f32 %v2639_v25, %v2253_v36  ;;  %v1520_v24 = vld [vmem:[%s3252_s5 + $0xa0] sm:$0xff] }
 0x13f   :  { %3306 = vst [vmem:[#allocation49_spill] sm:$0xff] %v2682_v30  ;;  %1614 = vperm.xlu0 %1969, %v1516_v45   ;;  %v424_v30 = vadd.f32 %v392_v50, %v228_v34  ;;  %v393_v34 = vmul.f32 %v2641_v26, %v2367_v15  ;;  %v619_v47 = vadd.f32 %v587_v37, %v423_v11  ;;  %v969_v11 = vld [vmem:[%s3251_s4 + $0x70] sm:$0xff] }
 0x140   :  { %1029 = vperm.xlu1 %1970, %v963_v8   ;;  %v589_v38 = vmul.f32 %v2650_v0, %v2521_v33  ;;  %v590_v39 = vmul.f32 %v2650_v0, %v2531_v21  ;;  %v637_v20 = vadd.f32 %v605_v52, %v441_v55  ;;  %v638_v8 = vadd.f32 %v606_v7, %v442_v35 }
 0x141   :  { %v776_v13 = vpop.permute.xlu1 %775  ;;  %v892_v36 = vmax.f32 %v860_v44, 0.0  ;;  %v843_v46 = vadd.f32 %v686_v3, %v619_v47  ;;  %v620_v62 = vadd.f32 %v588_v54, %v424_v30  ;;  %v426_v33 = vadd.f32 %v394_v17, %v230_v12  ;;  %v1522_v44 = vld [vmem:[%s3252_s5 + $0xb0] sm:$0xff]  ;;  %v971_v47 = vld [vmem:[%s3251_s4 + $0x80] sm:$0xff] }
 0x142   :  { %v766_v45 = vpop.permute.xlu0 %765  ;;  %v861_v51 = vadd.f32 %v776_v13, %v637_v20  ;;  %v425_v10 = vadd.f32 %v393_v34, %v229_v23  ;;  %v1524_v23 = vld [vmem:[%s3252_s5 + $0xc0] sm:$0xff] }
 0x143   :  { %v859_v6 = vadd.f32 %v766_v45, %v635_v61  ;;  %1624 = vperm.xlu0 %1969, %v1518_v28   ;;  %v967_v61 = vld [vmem:[%s3251_s4 + $0x60] sm:$0xff]  ;;  %v622_v7 = vadd.f32 %v590_v39, %v426_v33  ;;  %v875_v3 = vmax.f32 %v843_v46, 0.0  ;;  %v248_v39 = vmul.f32 %v2639_v25, %v2305_v56  ;;  %v1525_v46 = vld [vmem:[%s3252_s5 + $0xc8] sm:$0xff]  ;;  %v973_v56 = vld [vmem:[%s3251_s4 + $0x90] sm:$0xff] }
 0x144   :  { %1039 = vperm.xlu1 %1970, %v965_v49   ;;  %v621_v28 = vadd.f32 %v589_v38, %v425_v10  ;;  %v893_v13 = vmax.f32 %v861_v51, 0.0  ;;  %v592_v51 = vmul.f32 %v2650_v0, %v2541_v4 }
 0x145   :  { %v891_v31 = vmax.f32 %v859_v6, 0.0  ;;  %v781_v15 = vpop.permute.xlu1 %780  ;;  %v247_v6 = vmul.f32 %v2639_v25, %v2597_v60  ;;  %v607_v60 = vmul.f32 %v2650_v0, %v2662_v53  ;;  %v232_v53 = vmul.f32 %v2639_v25, %v2264_v40 }
 0x146   :  { %v862_v50 = vadd.f32 %v781_v15, %v638_v8  ;;  %v691_v21 = vpop.permute.xlu0 %690  ;;  %v412_v8 = vmul.f32 %v2641_v26, %v2307_v57  ;;  %v395_v57 = vmul.f32 %v2641_v26, %v2374_v18  ;;  %v396_v15 = vmul.f32 %v2641_v26, %v2266_v41  ;;  %v1526_v18 = vld [vmem:[%s3252_s5 + $0xd0] sm:$0xff] }
 0x147   :  { %v844_v37 = vadd.f32 %v691_v21, %v620_v62  ;;  %1634 = vperm.xlu0 %1969, %v1520_v24   ;;  %v947_v27 = vpack.c.bf16 %v892_v36, %v891_v31  ;;  %v411_v24 = vmul.f32 %v2641_v26, %v2454_v9  ;;  %v231_v36 = vmul.f32 %v2639_v25, %v2523_v48 }
 0x148   :  { %v894_v55 = vmax.f32 %v862_v50, 0.0  ;;  %1049 = vperm.xlu1 %1970, %v967_v61   ;;  %v608_v48 = vmul.f32 %v2650_v0, %v2446_v29  ;;  %v444_v62 = vadd.f32 %v412_v8, %v248_v39  ;;  %v975_v29 = vld [vmem:[%s3251_s4 + $0xa0] sm:$0xff]  ;;  %v591_v40 = vmul.f32 %v2650_v0, %v2369_v16  ;;  %v977_v16 = vld [vmem:[%s3251_s4 + $0xb0] sm:$0xff] }
 0x149   :  { %v876_v30 = vmax.f32 %v844_v37, 0.0  ;;  %v701_v54 = vpop.permute.xlu1 %700  ;;  %1820 = vmatprep.subr.bf16.mxu0 %v947_v27  ;;  %1932 = vmatprep.subr.bf16.mxu1 %v947_v27  ;;  %v443_v9 = vadd.f32 %v411_v24, %v247_v6  ;;  %v427_v61 = vadd.f32 %v395_v57, %v231_v36  ;;  %v428_v37 = vadd.f32 %v396_v15, %v232_v53  ;;  %v981_v6 = vld [vmem:[%s3251_s4 + $0xd0] sm:$0xff]  ;;  %v1503_v53 = vld [vmem:[%s3252_s5 + $0x18] sm:$0xff] }
 0x14a   :  { %v846_v49 = vadd.f32 %v701_v54, %v622_v7  ;;  %v696_v12 = vpop.permute.xlu0 %695  ;;  %v948_v45 = vpack.c.bf16 %v894_v55, %v893_v13  ;;  %v640_v41 = vadd.f32 %v608_v48, %v444_v62  ;;  %v1527_v7 = vld [vmem:[%s3252_s5 + $0xd8] sm:$0xff]  ;;  %v1528_v13 = vld [vmem:[%s3252_s5 + $0xe0] sm:$0xff]  ;;  %v233_v39 = vmul.f32 %v2639_v25, %v2533_v5 }
 0x14b   :  { %v845_v17 = vadd.f32 %v696_v12, %v621_v28  ;;  %1644 = vperm.xlu0 %1969, %v1522_v44   ;;  %v939_v35 = vpack.c.bf16 %v876_v30, %v875_v3  ;;  %v639_v33 = vadd.f32 %v607_v60, %v443_v9  ;;  %v623_v27 = vadd.f32 %v591_v40, %v427_v61 }
 0x14c   :  { %v878_v52 = vmax.f32 %v846_v49, 0.0  ;;  %1059 = vperm.xlu1 %1970, %v969_v11   ;;  %v624_v30 = vadd.f32 %v592_v51, %v428_v37  ;;  %v979_v49 = vld [vmem:[%s3251_s4 + $0xc0] sm:$0xff]  ;;  %v234_v5 = vmul.f32 %v2639_v25, %v2269_v42 }
 0x14d   :  { %v877_v34 = vmax.f32 %v845_v17, 0.0  ;;  %1821 = vmatpush3.bf16.msra.mxu0 %v939_v35  ;;  %1940 = vmatpush3.bf16.msra.mxu1 %v939_v35  ;;  %v249_v35 = vmul.f32 %v2639_v25, %v2605_v2  ;;  %v413_v2 = vmul.f32 %v2641_v26, %v2461_v32  ;;  %v1531_v32 = vld [vmem:[%s3252_s5 + $0xf8] sm:$0xff] }
 0x14e   :  { %v2733_v38 = vpop.permute.xlu1 %544  ;;  %1822 = vmatprep.subr.bf16.mxu0 %v948_v45  ;;  %1933 = vmatprep.subr.bf16.mxu1 %v948_v45  ;;  %v706_v21 = vpop.permute.xlu0 %705 }
 0x14f   :  { %v940_v20 = vpack.c.bf16 %v878_v52, %v877_v34  ;;  %1654 = vperm.xlu0 %1969, %v1524_v23   ;;  %v847_v44 = vadd.f32 %v706_v21, %v623_v27  ;;  %v1529_v23 = vld [vmem:[%s3252_s5 + $0xe8] sm:$0xff]  ;;  %v250_v34 = vmul.f32 %v2639_v25, %v2311_v58  ;;  %v397_v58 = vmul.f32 %v2641_v26, %v2383_v22 }
 0x150   :  { %1069 = vperm.xlu1 %1970, %v971_v47   ;;  %v414_v47 = vmul.f32 %v2641_v26, %v2313_v59  ;;  %v610_v59 = vmul.f32 %v2650_v0, %v2456_v14  ;;  %v445_v8 = vadd.f32 %v413_v2, %v249_v35  ;;  %v398_v22 = vmul.f32 %v2641_v26, %v2271_v43  ;;  %v3307_v27 = vld [vmem:[#allocation14_spill] sm:$0xff]  ;;  %v1511_v2 = vld [vmem:[%s3252_s5 + $0x58] sm:$0xff] }
 0x151   :  { %1823 = vmatpush3.bf16.msra.mxu0 %v940_v20  ;;  %1941 = vmatpush3.bf16.msra.mxu1 %v940_v20  ;;  %v879_v12 = vmax.f32 %v847_v44, 0.0  ;;  %v609_v20 = vmul.f32 %v2650_v0, %v2733_v38  ;;  %v1501_v38 = vld [vmem:[%s3252_s5 + $0x8] sm:$0xff]  ;;  %v429_v60 = vadd.f32 %v397_v58, %v233_v39  ;;  %v251_v21 = vmul.f32 %v2639_v25, %v2615_v1  ;;  %v3316_v58 = vld [vmem:[#allocation40_spill] sm:$0xff] }
 0x152   :  { %v446_v36 = vadd.f32 %v414_v47, %v250_v34  ;;  %v716_v48 = vpop.permute.xlu0 %715  ;;  %v430_v43 = vadd.f32 %v398_v22, %v234_v5  ;;  %v3309_v44 = vld [vmem:[#allocation31_spill] sm:$0xff]  ;;  %v3315_v39 = vld [vmem:[#allocation22_spill] sm:$0xff] }
 0x153   :  { %v786_v31 = vpop.permute.xlu1 %785  ;;  %1659 = vperm.xlu0 %1969, %v1525_v46   ;;  %v641_v14 = vadd.f32 %v609_v20, %v445_v8  ;;  %v593_v46 = vmul.f32 %v2650_v0, %v2376_v19  ;;  %v1509_v1 = vld [vmem:[%s3252_s5 + $0x48] sm:$0xff]  ;;  %v595_v20 = vmul.f32 %v2650_v0, %v3315_v39 }
 0x154   :  { %1079 = vperm.xlu1 %1970, %v973_v56   ;;  %v863_v50 = vadd.f32 %v786_v31, %v639_v33  ;;  %v594_v56 = vmul.f32 %v2650_v0, %v2549_v63  ;;  %v642_v42 = vadd.f32 %v610_v59, %v446_v36  ;;  %v1505_v63 = vld [vmem:[%s3252_s5 + $0x28] sm:$0xff]  ;;  %v596_v59 = vmul.f32 %v2650_v0, %v3316_v58 }
 0x155   :  { %v625_v31 = vadd.f32 %v593_v46, %v429_v60  ;;  %v1513_v60 = vld [vmem:[%s3252_s5 + $0x68] sm:$0xff] }
 0x156   :  { %v895_v3 = vmax.f32 %v863_v50, 0.0  ;;  %v626_v19 = vadd.f32 %v594_v56, %v430_v43  ;;  %v726_v5 = vpop.permute.xlu0 %725 }
 0x157   :  { %v791_v10 = vpop.permute.xlu1 %790  ;;  %1664 = vperm.xlu0 %1969, %v1526_v18   ;;  %v849_v62 = vadd.f32 %v716_v48, %v625_v31 }
 0x158   :  { %v864_v55 = vadd.f32 %v791_v10, %v640_v41  ;;  %1089 = vperm.xlu1 %1970, %v975_v29   ;;  %v1507_v41 = vld [vmem:[%s3252_s5 + $0x38] sm:$0xff] }
 0x159   :  { %v881_v51 = vmax.f32 %v849_v62, 0.0 }
 0x15a   :  { %v896_v4 = vmax.f32 %v864_v55, 0.0  ;;  %v252_v55 = vmul.f32 %v2639_v25, %v3307_v27  ;;  %v3322_v27 = vld [vmem:[#allocation25_spill] sm:$0xff] }
 0x15b   :  { %v711_v54 = vpop.permute.xlu1 %710  ;;  %1669 = vperm.xlu0 %1969, %v1527_v7   ;;  %v3308_v7 = vld [vmem:[#allocation15_spill] sm:$0xff] }
 0x15c   :  { %v848_v28 = vadd.f32 %v711_v54, %v624_v30  ;;  %1099 = vperm.xlu1 %1970, %v977_v16   ;;  %v949_v11 = vpack.c.bf16 %v896_v4, %v895_v3  ;;  %v416_v16 = vmul.f32 %v2641_v26, %v3308_v7  ;;  %v415_v3 = vmul.f32 %v2641_v26, %v3309_v44  ;;  %v3310_v4 = vld [vmem:[#allocation38_spill] sm:$0xff]  ;;  %v3323_v7 = vld [vmem:[#allocation32_spill] sm:$0xff] }
 0x15d   :  { %v235_v30 = vmul.f32 %v2639_v25, %v3310_v4 }
 0x15e   :  { %v880_v17 = vmax.f32 %v848_v28, 0.0  ;;  %1824 = vmatprep.subr.bf16.mxu0 %v949_v11  ;;  %1934 = vmatprep.subr.bf16.mxu1 %v949_v11  ;;  %v3311_v28 = vld [vmem:[#allocation23_spill] sm:$0xff]  ;;  %v448_v34 = vadd.f32 %v416_v16, %v252_v55  ;;  %v401_v55 = vmul.f32 %v2641_v26, %v3322_v27  ;;  %v614_v16 = vmul.f32 %v2650_v0, %v3323_v7 }
 0x15f   :  { %1674 = vperm.xlu0 %1969, %v1528_v13   ;;  %v399_v11 = vmul.f32 %v2641_v26, %v3311_v28  ;;  %v3312_v13 = vld [vmem:[#allocation30_spill] sm:$0xff] }
 0x160   :  { %1109 = vperm.xlu1 %1970, %v979_v49   ;;  %v553_v52 = vpop.permute.xlu1 %552  ;;  %v941_v45 = vpack.c.bf16 %v880_v17, %v879_v12  ;;  %v612_v49 = vmul.f32 %v2650_v0, %v3312_v13  ;;  %v447_v12 = vadd.f32 %v415_v3, %v251_v21  ;;  %v3313_v17 = vld [vmem:[#allocation6_spill] sm:$0xff]  ;;  %v3324_v3 = vld [vmem:[#allocation8_spill] sm:$0xff] }
 0x161   :  { %v611_v54 = vmul.f32 %v2650_v0, %v553_v52  ;;  %v236_v35 = vmul.f32 %v2639_v25, %v3313_v17  ;;  %v431_v47 = vadd.f32 %v399_v11, %v235_v30  ;;  %v238_v4 = vmul.f32 %v2639_v25, %v3324_v3  ;;  %v3327_v17 = vld [vmem:[#allocation42_spill] sm:$0xff] }
 0x162   :  { %1825 = vmatpush3.bf16.msra.mxu0 %v941_v45  ;;  %1942 = vmatpush3.bf16.msra.mxu1 %v941_v45 }
 0x163   :  { %1679 = vperm.xlu0 %1969, %v1529_v23   ;;  %v3314_v23 = vld [vmem:[#allocation7_spill] sm:$0xff]  ;;  %v627_v22 = vadd.f32 %v595_v20, %v431_v47 }
 0x164   :  { %1119 = vperm.xlu1 %1970, %v981_v6   ;;  %v400_v52 = vmul.f32 %v2641_v26, %v3314_v23  ;;  %v643_v6 = vadd.f32 %v611_v54, %v447_v12  ;;  %v1519_v54 = vld [vmem:[%s3252_s5 + $0x98] sm:$0xff]  ;;  %v1521_v47 = vld [vmem:[%s3252_s5 + $0xa8] sm:$0xff] }
 0x165   :  { %v796_v24 = vpop.permute.xlu1 %795 }
 0x166   :  { %v865_v57 = vadd.f32 %v796_v24, %v641_v14  ;;  %v851_v14 = vadd.f32 %v726_v5, %v627_v22  ;;  %v1523_v5 = vld [vmem:[%s3252_s5 + $0xb8] sm:$0xff] }
 0x167   :  { %1689 = vperm.xlu0 %1969, %v1531_v32   ;;  %v644_v32 = vadd.f32 %v612_v49, %v448_v34  ;;  %v3326_v49 = vld [vmem:[#allocation24_spill] sm:$0xff] }
 0x168   :  { %1539 = vperm.xlu1 %1970, %v1501_v38   ;;  %v897_v61 = vmax.f32 %v865_v57, 0.0  ;;  %v432_v38 = vadd.f32 %v400_v52, %v236_v35  ;;  %v883_v43 = vmax.f32 %v851_v14, 0.0  ;;  %v597_v12 = vmul.f32 %v2650_v0, %v3326_v49  ;;  %v736_v52 = vpop.permute.xlu0 %735  ;;  %v3328_v14 = vld [vmem:[#allocation48_spill] sm:$0xff] }
 0x169   :  { %v801_v9 = vpop.permute.xlu1 %800  ;;  %v598_v35 = vmul.f32 %v2650_v0, %v3327_v17  ;;  %v3341_v17 = vld [vmem:[#allocation12_spill] sm:$0xff] }
 0x16a   :  { %v866_v15 = vadd.f32 %v801_v9, %v642_v42  ;;  %v628_v57 = vadd.f32 %v596_v59, %v432_v38 }
 0x16c   :  { %v898_v33 = vmax.f32 %v866_v15, 0.0  ;;  %1549 = vperm.xlu1 %1970, %v1503_v53   ;;  %v1515_v53 = vld [vmem:[%s3252_s5 + $0x78] sm:$0xff]  ;;  %v3317_v15 = vld [vmem:[#allocation47_spill] sm:$0xff] }
 0x16d   :  { %v721_v18 = vpop.permute.xlu1 %720  ;;  %v253_v62 = vmul.f32 %v2639_v25, %v3317_v15  ;;  %v3332_v15 = vld [vmem:[#allocation41_spill] sm:$0xff] }
 0x16e   :  { %v950_v29 = vpack.c.bf16 %v898_v33, %v897_v61  ;;  %v850_v40 = vadd.f32 %v721_v18, %v626_v19  ;;  %v3318_v19 = vld [vmem:[#allocation16_spill] sm:$0xff] }
 0x16f   :  { %v254_v18 = vmul.f32 %v2639_v25, %v3318_v19  ;;  %v983_v19 = vld [vmem:[%s3251_s4 + $0xe0] sm:$0xff] }
 0x170   :  { %v882_v50 = vmax.f32 %v850_v40, 0.0  ;;  %1559 = vperm.xlu1 %1970, %v1505_v63   ;;  %1826 = vmatprep.subr.bf16.mxu0 %v950_v29  ;;  %v3319_v63 = vld [vmem:[#allocation17_spill] sm:$0xff]  ;;  %v1517_v40 = vld [vmem:[%s3252_s5 + $0x88] sm:$0xff] }
 0x171   :  { %1935 = vmatprep.subr.bf16.mxu1 %v950_v29  ;;  %v418_v29 = vmul.f32 %v2641_v26, %v3319_v63 }
 0x172   :  { %v942_v10 = vpack.c.bf16 %v882_v50, %v881_v51  ;;  %v561_v37 = vpop.permute.xlu1 %560  ;;  %v3320_v51 = vld [vmem:[#allocation33_spill] sm:$0xff] }
 0x173   :  { %v417_v50 = vmul.f32 %v2641_v26, %v3320_v51  ;;  %v450_v28 = vadd.f32 %v418_v29, %v254_v18  ;;  %v3333_v18 = vld [vmem:[#allocation27_spill] sm:$0xff]  ;;  %v3334_v29 = vld [vmem:[#allocation34_spill] sm:$0xff] }
 0x174   :  { %1569 = vperm.xlu1 %1970, %v1507_v41   ;;  %1827 = vmatpush3.bf16.msra.mxu0 %v942_v10  ;;  %v3321_v41 = vld [vmem:[#allocation39_spill] sm:$0xff]  ;;  %v403_v63 = vmul.f32 %v2641_v26, %v3333_v18 }
 0x175   :  { %1943 = vmatpush3.bf16.msra.mxu1 %v942_v10  ;;  %v237_v21 = vmul.f32 %v2639_v25, %v3321_v41  ;;  %v613_v10 = vmul.f32 %v2650_v0, %v561_v37  ;;  %v449_v44 = vadd.f32 %v417_v50, %v253_v62  ;;  %v646_v23 = vadd.f32 %v614_v16, %v450_v28  ;;  %v3335_v50 = vld [vmem:[#allocation10_spill] sm:$0xff] }
 0x176   :  { %v239_v62 = vmul.f32 %v2639_v25, %v3332_v15  ;;  %v240_v41 = vmul.f32 %v2639_v25, %v3335_v50  ;;  %v3340_v28 = vld [vmem:[#allocation26_spill] sm:$0xff] }
 0x177   :  { %v806_v45 = vpop.permute.xlu1 %805  ;;  %v433_v11 = vadd.f32 %v401_v55, %v237_v21  ;;  %v645_v13 = vadd.f32 %v613_v10, %v449_v44  ;;  %v3336_v21 = vld [vmem:[#allocation11_spill] sm:$0xff]  ;;  %v746_v10 = vpop.permute.xlu0 %745  ;;  %v3337_v44 = vld [vmem:[#allocation20_spill] sm:$0xff] }
 0x178   :  { %1579 = vperm.xlu1 %1970, %v1509_v1   ;;  %v867_v8 = vadd.f32 %v806_v45, %v643_v6  ;;  %v3325_v1 = vld [vmem:[#allocation9_spill] sm:$0xff]  ;;  %v435_v7 = vadd.f32 %v403_v63, %v239_v62  ;;  %v258_v3 = vmul.f32 %v2639_v25, %v3337_v44 }
 0x179   :  { %v402_v37 = vmul.f32 %v2641_v26, %v3325_v1 }
 0x17a   :  { %v899_v46 = vmax.f32 %v867_v8, 0.0 }
 0x17b   :  { %v811_v24 = vpop.permute.xlu1 %810  ;;  %v434_v6 = vadd.f32 %v402_v37, %v238_v4  ;;  %v3338_v4 = vld [vmem:[#allocation21_spill] sm:$0xff]  ;;  %v984_v37 = vld [vmem:[%s3251_s4 + $0xe8] sm:$0xff] }
 0x17c   :  { %v868_v36 = vadd.f32 %v811_v24, %v644_v32  ;;  %1589 = vperm.xlu1 %1970, %v1511_v2   ;;  %v629_v2 = vadd.f32 %v597_v12, %v433_v11  ;;  %v599_v11 = vmul.f32 %v2650_v0, %v3340_v28  ;;  %v1974_v28 = vld [vmem:[%s3250_s3 + $0x80] ss:$8 sps:$4 sm:$0xff]  }
 0x17d   :  { %v630_v8 = vadd.f32 %v598_v35, %v434_v6  ;;  %v242_v35 = vmul.f32 %v2639_v25, %v3341_v17  ;;  %v3344_v6 = vld [vmem:[#allocation49_spill] sm:$0xff]  ;;  %v1983_v17 = vld [vmem:[%s3250_s3 + $0x24] ss:$8 sps:$4 sm:$0xff]  }
 0x17e   :  { %v900_v56 = vmax.f32 %v868_v36, 0.0  ;;  %v853_v20 = vadd.f32 %v736_v52, %v629_v2  ;;  %v257_v2 = vmul.f32 %v2639_v25, %v3344_v6  ;;  %v1994_v6 = vld [vmem:[%s3250_s3 + $0xb0] ss:$8 sps:$4 sm:$0xff]  }
 0x17f   :  { %v731_v42 = vpop.permute.xlu1 %730 }
 0x180   :  { %v951_v48 = vpack.c.bf16 %v900_v56, %v899_v46  ;;  %v852_v9 = vadd.f32 %v731_v42, %v628_v57  ;;  %1599 = vperm.xlu1 %1970, %v1513_v60   ;;  %v885_v22 = vmax.f32 %v853_v20, 0.0  ;;  %v982_v60 = vld [vmem:[%s3251_s4 + $0xd8] sm:$0xff]  ;;  %v255_v46 = vmul.f32 %v2639_v25, %v3328_v14  ;;  %v3329_v42 = vld [vmem:[#allocation18_spill] sm:$0xff] }
 0x182   :  { %v884_v31 = vmax.f32 %v852_v9, 0.0  ;;  %1828 = vmatprep.subr.bf16.mxu0 %v951_v48  ;;  %1936 = vmatprep.subr.bf16.mxu1 %v951_v48  ;;  %v256_v48 = vmul.f32 %v2639_v25, %v3329_v42  ;;  %v3330_v9 = vld [vmem:[#allocation19_spill] sm:$0xff] }
 0x184   :  { %v943_v61 = vpack.c.bf16 %v884_v31, %v883_v43  ;;  %1609 = vperm.xlu1 %1970, %v1515_v53   ;;  %v569_v33 = vpop.permute.xlu1 %568  ;;  %v420_v53 = vmul.f32 %v2641_v26, %v3330_v9  ;;  %v3331_v43 = vld [vmem:[#allocation35_spill] sm:$0xff] }
 0x185   :  { %v419_v31 = vmul.f32 %v2641_v26, %v3331_v43 }
 0x186   :  { %1829 = vmatpush3.bf16.msra.mxu0 %v943_v61  ;;  %1944 = vmatpush3.bf16.msra.mxu1 %v943_v61  ;;  %v615_v61 = vmul.f32 %v2650_v0, %v569_v33  ;;  %v404_v33 = vmul.f32 %v2641_v26, %v3336_v21  ;;  %v452_v55 = vadd.f32 %v420_v53, %v256_v48  ;;  %v3348_v53 = vld [vmem:[#allocation45_spill] sm:$0xff] }
 0x187   :  { %v451_v51 = vadd.f32 %v419_v31, %v255_v46  ;;  %v602_v43 = vmul.f32 %v2650_v0, %v3348_v53 }
 0x188   :  { %1619 = vperm.xlu1 %1970, %v1517_v40   ;;  %v616_v40 = vmul.f32 %v2650_v0, %v3334_v29  ;;  %v436_v12 = vadd.f32 %v404_v33, %v240_v41 }
 0x189   :  { %v816_v30 = vpop.permute.xlu1 %815  ;;  %v647_v16 = vadd.f32 %v615_v61, %v451_v51  ;;  %v3349_v51 = vld [vmem:[#allocation28_spill] sm:$0xff] }
 0x18a   :  { %v869_v45 = vadd.f32 %v816_v30, %v645_v13  ;;  %v422_v30 = vmul.f32 %v2641_v26, %v3338_v4  ;;  %v648_v49 = vadd.f32 %v616_v40, %v452_v55  ;;  %v601_v50 = vmul.f32 %v2650_v0, %v3349_v51 }
 0x18c   :  { %1629 = vperm.xlu1 %1970, %v1519_v54   ;;  %v901_v58 = vmax.f32 %v869_v45, 0.0  ;;  %v3339_v54 = vld [vmem:[#allocation44_spill] sm:$0xff] }
 0x18d   :  { %v821_v34 = vpop.permute.xlu1 %820  ;;  %v600_v1 = vmul.f32 %v2650_v0, %v3339_v54  ;;  %v3342_v45 = vld [vmem:[#allocation36_spill] sm:$0xff] }
 0x18e   :  { %v870_v39 = vadd.f32 %v821_v34, %v646_v23  ;;  %v618_v23 = vmul.f32 %v2650_v0, %v3342_v45  ;;  %v3343_v34 = vld [vmem:[#allocation13_spill] sm:$0xff] }
 0x18f   :  { %v1987_v45 = vld [vmem:[%s3250_s3 + $0x20] ss:$8 sps:$4 sm:$0xff]  }
 0x190   :  { %v902_v59 = vmax.f32 %v870_v39, 0.0  ;;  %1639 = vperm.xlu1 %1970, %v1521_v47   ;;  %v406_v47 = vmul.f32 %v2641_v26, %v3343_v34  ;;  %v631_v39 = vadd.f32 %v599_v11, %v435_v7  ;;  %v1977_v11 = vld [vmem:[%s3250_s3 + $0x14] ss:$8 sps:$4 sm:$0xff]  }
 0x191   :  { %v741_v32 = vpop.permute.xlu1 %740  ;;  %v1991_v34 = vld [vmem:[%s3250_s3 + $0xb4] ss:$8 sps:$4 sm:$0xff]  }
 0x192   :  { %v952_v24 = vpack.c.bf16 %v902_v59, %v901_v58  ;;  %v854_v38 = vadd.f32 %v741_v32, %v630_v8  ;;  %v454_v58 = vadd.f32 %v422_v30, %v258_v3  ;;  %v3345_v59 = vld [vmem:[#allocation37_spill] sm:$0xff]  ;;  %v3346_v32 = vld [vmem:[#allocation43_spill] sm:$0xff]  ;;  %v438_v62 = vadd.f32 %v406_v47, %v242_v35 }
 0x193   :  { %v421_v8 = vmul.f32 %v2641_v26, %v3345_v59  ;;  %v1761_v30 = vld [vmem:[#allocation2] sm:$0x1]  ;;  %v1985_v35 = vld [vmem:[%s3250_s3 + $0xa4] ss:$8 sps:$4 sm:$0xff]   ;;  %v1993_v47 = vld [vmem:[%s3250_s3 + $0x30] ss:$8 sps:$4 sm:$0xff]  }
 0x194   :  { %v886_v36 = vmax.f32 %v854_v38, 0.0  ;;  %1649 = vperm.xlu1 %1970, %v1523_v5   ;;  %1830 = vmatprep.subr.bf16.mxu0 %v952_v24  ;;  %v241_v5 = vmul.f32 %v2639_v25, %v3346_v32  ;;  %v632_v38 = vadd.f32 %v600_v1, %v436_v12  ;;  %v650_v48 = vadd.f32 %v618_v23, %v454_v58  ;;  %v1982_v12 = vld [vmem:[%s3250_s3 + $0x90] ss:$8 sps:$4 sm:$0xff]   ;;  %v1988_v23 = vld [vmem:[%s3250_s3 + $0xa0] ss:$8 sps:$4 sm:$0xff]  }
 0x195   :  { %1937 = vmatprep.subr.bf16.mxu1 %v952_v24  ;;  %v841_v24 = vpop.permute.xlu0 %840  ;;  %v453_v25 = vadd.f32 %v421_v8, %v257_v2  ;;  %v634_v41 = vadd.f32 %v602_v43, %v438_v62  ;;  %v1995_v2 = vld [vmem:[%s3250_s3 + $0x44] ss:$8 sps:$4 sm:$0xff]   ;;  %v2000_v58 = vld [vmem:[%s3250_s3 + $0xc0] ss:$8 sps:$4 sm:$0xff]   ;;  %v2001_v59 = vld [vmem:[%s3250_s3 + $0x54] ss:$8 sps:$4 sm:$0xff]  }
 0x196   :  { %v944_v56 = vpack.c.bf16 %v886_v36, %v885_v22  ;;  %v577_v57 = vpop.permute.xlu1 %576  ;;  %v985_v22 = vld [vmem:[%s3251_s4 + $0xf0] sm:$0xff]  ;;  %v855_v36 = vadd.f32 %v746_v10, %v631_v39  ;;  %v874_v18 = vadd.f32 %v841_v24, %v650_v48  ;;  %v1997_v39 = vld [vmem:[%s3250_s3 + $0xc4] ss:$8 sps:$4 sm:$0xff]  }
 0x197   :  { %v1530_v10 = vld [vmem:[%s3252_s5 + $0xf0] sm:$0xff]  ;;  %v2007_v24 = vld [vmem:[%s3250_s3 + $0x64] ss:$8 sps:$4 sm:$0xff]  }
 0x198   :  { %1124 = vperm.xlu1 %1970, %v982_v60   ;;  %1831 = vmatpush3.bf16.msra.mxu0 %v944_v56  ;;  %v617_v60 = vmul.f32 %v2650_v0, %v577_v57  ;;  %v986_v57 = vld [vmem:[%s3251_s4 + $0xf8] sm:$0xff] }
 0x199   :  { %1945 = vmatpush3.bf16.msra.mxu1 %v944_v56  ;;  %v3347_v56 = vld [vmem:[#allocation29_spill] sm:$0xff]  ;;  %v761_v29 = vpop.permute.xlu0 %760 }
 0x19a   :  { %v405_v42 = vmul.f32 %v2641_v26, %v3347_v56  ;;  %v649_v26 = vadd.f32 %v617_v60, %v453_v25  ;;  %v858_v55 = vadd.f32 %v761_v29, %v634_v41  ;;  %v2003_v8 = vld [vmem:[%s3250_s3 + $0xd4] ss:$8 sps:$4 sm:$0xff]   ;;  %v2005_v32 = vld [vmem:[%s3250_s3 + $0x50] ss:$8 sps:$4 sm:$0xff]  }
 0x19b   :  { %v826_v27 = vpop.permute.xlu1 %825  ;;  %v2013_v60 = vld [vmem:[%s3250_s3 + $0x74] ss:$8 sps:$4 sm:$0xff]   ;;  %v2018_v56 = vld [vmem:[%s3250_s3 + $0xf0] ss:$8 sps:$4 sm:$0xff]  }
 0x19c   :  { %1129 = vperm.xlu1 %1970, %v983_v19   ;;  %v871_v13 = vadd.f32 %v826_v27, %v647_v16  ;;  %v437_v61 = vadd.f32 %v405_v42, %v241_v5  ;;  %v887_v19 = vmax.f32 %v855_v36, 0.0  ;;  %v906_v27 = vmax.f32 %v874_v18, 0.0  ;;  %v2006_v5 = vld [vmem:[%s3250_s3 + $0xd0] ss:$8 sps:$4 sm:$0xff]   ;;  %v2012_v36 = vld [vmem:[%s3250_s3 + $0xe0] ss:$8 sps:$4 sm:$0xff]  }
 0x19d   :  { %v890_v0 = vmax.f32 %v858_v55, 0.0  ;;  %v995_v48 = vpop.permute.xlu0 %994 }
 0x19e   :  { %v903_v14 = vmax.f32 %v871_v13, 0.0  ;;  %v633_v16 = vadd.f32 %v601_v50, %v437_v61  ;;  %v1979_v13 = vld [vmem:[%s3250_s3 + $0x94] ss:$8 sps:$4 sm:$0xff]  }
 0x19f   :  { %v831_v52 = vpop.permute.xlu1 %830 }
 0x1a0   :  { %v872_v20 = vadd.f32 %v831_v52, %v648_v49  ;;  %1134 = vperm.xlu1 %1970, %v984_v37   ;;  %v1971_v37 = vld [vmem:[%s3250_s3] ss:$8 sps:$4 sm:$0xff]   ;;  %v1981_v49 = vld [vmem:[%s3250_s3 + $0x10] ss:$8 sps:$4 sm:$0xff]   ;;  %v1989_v52 = vld [vmem:[%s3250_s3 + $0x34] ss:$8 sps:$4 sm:$0xff]  }
 0x1a1   :  { %v3052_v53 = vpop.permute.xlu0 %1004 }
 0x1a2   :  { %v904_v46 = vmax.f32 %v872_v20, 0.0  ;;  %v1999_v20 = vld [vmem:[%s3250_s3 + $0x40] ss:$8 sps:$4 sm:$0xff]  }
 0x1a3   :  { %v751_v9 = vpop.permute.xlu1 %750 }
 0x1a4   :  { %v953_v31 = vpack.c.bf16 %v904_v46, %v903_v14  ;;  %v856_v15 = vadd.f32 %v751_v9, %v632_v38  ;;  %1139 = vperm.xlu1 %1970, %v985_v22   ;;  %v2009_v38 = vld [vmem:[%s3250_s3 + $0xe4] ss:$8 sps:$4 sm:$0xff]   ;;  %v2011_v22 = vld [vmem:[%s3250_s3 + $0x60] ss:$8 sps:$4 sm:$0xff]   ;;  %v2015_v14 = vld [vmem:[%s3250_s3 + $0xf4] ss:$8 sps:$4 sm:$0xff]  }
 0x1a5   :  { %v2017_v46 = vld [vmem:[%s3250_s3 + $0x70] ss:$8 sps:$4 sm:$0xff]   ;;  %v3056_v25 = vpop.permute.xlu0 %1014  ;;  %s2048_s3 = smov [#allocation3]  }
 0x1a6   :  { %v888_v63 = vmax.f32 %v856_v15, 0.0  ;;  %1832 = vmatprep.subr.bf16.mxu0 %v953_v31  ;;  %1938 = vmatprep.subr.bf16.mxu1 %v953_v31  ;;  %s1780_s5 = sshll.u32 %s2048_s3, 4  ;;  %s1781_s5 = int_to_ptr.vmem [resolvable:$true] %s1780_s5 }
 0x1a7   :  { %v836_v40 = vpop.permute.xlu1 %835  ;;  %s2021_s9 = scalar_lea.vmem %s1781_s5, 16  ;;  %s2025_s10 = scalar_lea.vmem %s1781_s5, 32 }
 0x1a8   :  { %v945_v21 = vpack.c.bf16 %v888_v63, %v887_v19  ;;  %v873_v33 = vadd.f32 %v836_v40, %v649_v26  ;;  %1144 = vperm.xlu1 %1970, %v986_v57   ;;  %p2022_p0 = scmp.ne.s32.totalorder %s1781_s5, %s2021_s9  ;;  %p2026_p1 = scmp.lt.s32.totalorder %s1781_s5, %s1781_s5 }
 0x1a9   :  { %v3060_v15 = vpop.permute.xlu0 %1024  ;;  %p2027_p2 = scmp.lt.s32.totalorder %s2025_s10, %s2021_s9 }
 0x1aa   :  { %v905_v7 = vmax.f32 %v873_v33, 0.0  ;;  %1833 = vmatpush3.bf16.msra.mxu0 %v945_v21  ;;  %1946 = vmatpush3.bf16.msra.mxu1 %v945_v21 }
 0x1ab   :  { %v756_v44 = vpop.permute.xlu1 %755  ;;  %p2028_p3 = por %p2027_p2, %p2026_p1 }
 0x1ac   :  { %v954_v3 = vpack.c.bf16 %v906_v27, %v905_v7  ;;  %v857_v4 = vadd.f32 %v756_v44, %v633_v16  ;;  %1684 = vperm.xlu1 %1970, %v1530_v10  }
 0x1ad   :  { %v3064_v61 = vpop.permute.xlu0 %1034  ;;  %p2029_p4 = pnand %p2028_p3, %p2022_p0 }
 0x1ae   :  { %v889_v54 = vmax.f32 %v857_v4, 0.0  ;;  %1834 = vmatprep.subr.bf16.mxu0 %v954_v3  ;;  %1939 = vmatprep.subr.bf16.mxu1 %v954_v3 }
 0x1af   :  { %v990_v42 = vpop.permute.xlu1 %989 }
 0x1b0   :  { %v946_v1 = vpack.c.bf16 %v890_v0, %v889_v54  ;;  %1764 = vperm.xlu1 %1970, %v1761_v30  }
 0x1b1   :  { %v3068_v19 = vpop.permute.xlu0 %1044 }
 0x1b2   :  { %1835 = vmatpush3.bf16.msra.mxu0 %v946_v1  ;;  %1947 = vmatpush3.bf16.msra.mxu1 %v946_v1 }
 0x1b3   :  { %v3050_v9 = vpop.permute.xlu1 %999 }
 0x1b5   :  { %1340 = vmatmul.mubr.bf16.vlgmr.msra.gmra.mrb[0].mxu0 %v1971_v37  ;;  %1404 = vmatmul.mubr.bf16.vlgmr.msra.gmra.mrb[0].mxu1 %v1974_v28  ;;  %v3072_v63 = vpop.permute.xlu0 %1054 }
 0x1b6   :  { %1347 = vmatprep.mubr.bf16.mxu0 %v1977_v11  ;;  %1411 = vmatprep.mubr.bf16.mxu1 %v1979_v13 }
 0x1b7   :  { %v3054_v43 = vpop.permute.xlu1 %1009 }
 0x1b9   :  { %v3076_v29 = vpop.permute.xlu0 %1064 }
 0x1bb   :  { %v3058_v31 = vpop.permute.xlu1 %1019 }
 0x1bd   :  { %1348 = vmatmul.mubr.bf16.gmra.mrb[4].mxu0 %v1981_v49  ;;  %1412 = vmatmul.mubr.bf16.gmra.mrb[4].mxu1 %v1982_v12  ;;  %v3080_v51 = vpop.permute.xlu0 %1074 }
 0x1be   :  { %1355 = vmatprep.mubr.bf16.mxu0 %v1983_v17  ;;  %1419 = vmatprep.mubr.bf16.mxu1 %v1985_v35 }
 0x1bf   :  { %v3062_v62 = vpop.permute.xlu1 %1029 }
 0x1c1   :  { %v3084_v41 = vpop.permute.xlu0 %1084 }
 0x1c3   :  { %v3066_v57 = vpop.permute.xlu1 %1039 }
 0x1c5   :  { %1356 = vmatmul.mubr.bf16.gmra.mrb[8].mxu0 %v1987_v45  ;;  %1420 = vmatmul.mubr.bf16.gmra.mrb[8].mxu1 %v1988_v23  ;;  %v3088_v33 = vpop.permute.xlu0 %1094 }
 0x1c6   :  { %1363 = vmatprep.mubr.bf16.mxu0 %v1989_v52  ;;  %1427 = vmatprep.mubr.bf16.mxu1 %v1991_v34 }
 0x1c7   :  { %v3070_v18 = vpop.permute.xlu1 %1049 }
 0x1c9   :  { %v3092_v27 = vpop.permute.xlu0 %1104 }
 0x1cb   :  { %v3074_v26 = vpop.permute.xlu1 %1059 }
 0x1cd   :  { %1364 = vmatmul.mubr.bf16.gmra.mrb[12].mxu0 %v1993_v47  ;;  %1428 = vmatmul.mubr.bf16.gmra.mrb[12].mxu1 %v1994_v6  ;;  %v3096_v7 = vpop.permute.xlu0 %1114 }
 0x1ce   :  { %1371 = vmatprep.mubr.bf16.mxu0 %v1995_v2  ;;  %1435 = vmatprep.mubr.bf16.mxu1 %v1997_v39 }
 0x1cf   :  { %v3078_v40 = vpop.permute.xlu1 %1069 }
 0x1d1   :  { %v1535_v44 = vpop.permute.xlu0 %1534 }
 0x1d3   :  { %v3082_v50 = vpop.permute.xlu1 %1079 }
 0x1d5   :  { %1372 = vmatmul.mubr.bf16.gmra.mrb[16].mxu0 %v1999_v20  ;;  %1436 = vmatmul.mubr.bf16.gmra.mrb[16].mxu1 %v2000_v58  ;;  %v1545_v4 = vpop.permute.xlu0 %1544 }
 0x1d6   :  { %1379 = vmatprep.mubr.bf16.mxu0 %v2001_v59  ;;  %1443 = vmatprep.mubr.bf16.mxu1 %v2003_v8 }
 0x1d7   :  { %v3086_v21 = vpop.permute.xlu1 %1089 }
 0x1d9   :  { %v3100_v0 = vpop.permute.xlu0 %1554 }
 0x1db   :  { %v3090_v10 = vpop.permute.xlu1 %1099 }
 0x1dd   :  { %1380 = vmatmul.mubr.bf16.gmra.mrb[20].mxu0 %v2005_v32  ;;  %1444 = vmatmul.mubr.bf16.gmra.mrb[20].mxu1 %v2006_v5  ;;  %v3104_v1 = vpop.permute.xlu0 %1564 }
 0x1de   :  { %1387 = vmatprep.mubr.bf16.mxu0 %v2007_v24  ;;  %1451 = vmatprep.mubr.bf16.mxu1 %v2009_v38 }
 0x1df   :  { %v3094_v55 = vpop.permute.xlu1 %1109 }
 0x1e1   :  { %v3108_v28 = vpop.permute.xlu0 %1574 }
 0x1e3   :  { %v3098_v16 = vpop.permute.xlu1 %1119 }
 0x1e5   :  { %1388 = vmatmul.mubr.bf16.gmra.mrb[24].mxu0 %v2011_v22  ;;  %1452 = vmatmul.mubr.bf16.gmra.mrb[24].mxu1 %v2012_v36  ;;  %v3116_v59 = vpop.permute.xlu0 %1584 }
 0x1e6   :  { %1395 = vmatprep.mubr.bf16.mxu0 %v2013_v60  ;;  %1459 = vmatprep.mubr.bf16.mxu1 %v2015_v14 }
 0x1e7   :  { %v1540_v3 = vpop.permute.xlu1 %1539 }
 0x1eb   :  { %v1550_v30 = vpop.permute.xlu1 %1549 }
 0x1ed   :  { %1396 = vmatmul.mubr.bf16.gmra.mrb[28].mxu0 %v2017_v46  ;;  %1460 = vmatmul.mubr.bf16.gmra.mrb[28].mxu1 %v2018_v56 }
 0x1ef   :  { %v3102_v54 = vpop.permute.xlu1 %1559 }
 0x1f3   :  { %v3106_v37 = vpop.permute.xlu1 %1569 }
 0x1f7   :  { %v3110_v11 = vpop.permute.xlu1 %1579 }
 0x1fb   :  { %v3118_v8 = vpop.permute.xlu1 %1589 }
 0x288   :  { %v1836_v13 = vpop.f32.mrb[0].mxu0  ;;  %v1884_v49 = vpop.f32.mrb[0].mxu1 }
 0x289   :  { %v1837_v12 = vpop.f32.mrb[1].mxu0  ;;  %v1885_v17 = vpop.f32.mrb[1].mxu1 }
 0x28a   :  { %v1838_v35 = vadd.f32 %v1837_v12, %v1836_v13  ;;  %v3112_v45 = vadd.f32 %v1885_v17, %v1884_v49  ;;  %v1839_v23 = vpop.f32.mrb[2].mxu0  ;;  %v1887_v52 = vpop.f32.mrb[2].mxu1 }
 0x28b   :  { %v1840_v34 = vpop.f32.mrb[3].mxu0  ;;  %v1888_v47 = vpop.f32.mrb[3].mxu1 }
 0x28c   :  { %v1342_v6 = vadd.f32 %v1838_v35, %v990_v42  ;;  %v1841_v2 = vadd.f32 %v1840_v34, %v1839_v23  ;;  %v3114_v39 = vadd.f32 %v1888_v47, %v1887_v52  ;;  %v3126_v34 = vpop.permute.xlu0 %1594 }
 0x28e   :  { %v1468_v20 = vmax.f32 %v1342_v6, 0.0  ;;  %v1345_v58 = vadd.f32 %v1841_v2, %v995_v48 }
 0x290   :  { %v1469_v32 = vmax.f32 %v1345_v58, 0.0  ;;  %v1842_v5 = vpop.f32.mrb[4].mxu0  ;;  %v1890_v24 = vpop.f32.mrb[4].mxu1  ;;  %v1692_v36 = vmul.f32 %v1535_v44, %v1468_v20 }
 0x291   :  { %v1843_v38 = vpop.f32.mrb[5].mxu0  ;;  %v1891_v22 = vpop.f32.mrb[5].mxu1 }
 0x292   :  { %v1693_v60 = vmul.f32 %v1540_v3, %v1469_v32  ;;  %v1844_v14 = vadd.f32 %v1843_v38, %v1842_v5  ;;  %v3120_v46 = vadd.f32 %v1891_v22, %v1890_v24  ;;  %v1845_v56 = vpop.f32.mrb[6].mxu0  ;;  %v1893_v42 = vpop.f32.mrb[6].mxu1 }
 0x293   :  { %v1846_v13 = vpop.f32.mrb[7].mxu0  ;;  %v1894_v49 = vpop.f32.mrb[7].mxu1 }
 0x294   :  { %v1724_v12 = vadd.f32 %v1693_v60, %v1692_v36  ;;  %v1350_v48 = vadd.f32 %v1844_v14, %v3050_v9  ;;  %v1847_v17 = vadd.f32 %v1846_v13, %v1845_v56  ;;  %v3123_v35 = vadd.f32 %v1894_v49, %v1893_v42  ;;  %v3128_v44 = vpop.permute.xlu1 %1599  ;;  %v3136_v49 = vpop.permute.xlu0 %1604 }
 0x296   :  { %v1470_v23 = vmax.f32 %v1350_v48, 0.0  ;;  %v1353_v52 = vadd.f32 %v1847_v17, %v3052_v53 }
 0x298   :  { %v1694_v3 = vmul.f32 %v1545_v4, %v1470_v23  ;;  %v1471_v47 = vmax.f32 %v1353_v52, 0.0  ;;  %v1848_v6 = vpop.f32.mrb[8].mxu0  ;;  %v1896_v2 = vpop.f32.mrb[8].mxu1 }
 0x299   :  { %v1849_v20 = vpop.f32.mrb[9].mxu0  ;;  %v1897_v58 = vpop.f32.mrb[9].mxu1 }
 0x29a   :  { %v1725_v32 = vadd.f32 %v1724_v12, %v1694_v3  ;;  %v1695_v5 = vmul.f32 %v1550_v30, %v1471_v47  ;;  %v1850_v24 = vadd.f32 %v1849_v20, %v1848_v6  ;;  %v3130_v9 = vadd.f32 %v1897_v58, %v1896_v2  ;;  %v1851_v38 = vpop.f32.mrb[10].mxu0  ;;  %v1899_v22 = vpop.f32.mrb[10].mxu1 }
 0x29b   :  { %v1852_v36 = vpop.f32.mrb[11].mxu0  ;;  %v1900_v60 = vpop.f32.mrb[11].mxu1 }
 0x29c   :  { %v1726_v53 = vadd.f32 %v1725_v32, %v1695_v5  ;;  %v1358_v14 = vadd.f32 %v1850_v24, %v3054_v43  ;;  %v1853_v56 = vadd.f32 %v1852_v36, %v1851_v38  ;;  %v3133_v42 = vadd.f32 %v1900_v60, %v1899_v22  ;;  %v3138_v12 = vpop.permute.xlu1 %1609  ;;  %v3148_v60 = vpop.permute.xlu0 %1614 }
 0x29e   :  { %v1472_v4 = vmax.f32 %v1358_v14, 0.0  ;;  %v1361_v13 = vadd.f32 %v1853_v56, %v3056_v25 }
 0x2a0   :  { %v1696_v30 = vmul.f32 %v3100_v0, %v1472_v4  ;;  %v1473_v48 = vmax.f32 %v1361_v13, 0.0  ;;  %v1854_v17 = vpop.f32.mrb[12].mxu0  ;;  %v1902_v23 = vpop.f32.mrb[12].mxu1 }
 0x2a1   :  { %v1855_v52 = vpop.f32.mrb[13].mxu0  ;;  %v1903_v3 = vpop.f32.mrb[13].mxu1 }
 0x2a2   :  { %v1727_v47 = vadd.f32 %v1726_v53, %v1696_v30  ;;  %v1697_v43 = vmul.f32 %v3102_v54, %v1473_v48  ;;  %v1856_v6 = vadd.f32 %v1855_v52, %v1854_v17  ;;  %v3142_v2 = vadd.f32 %v1903_v3, %v1902_v23  ;;  %v1857_v20 = vpop.f32.mrb[14].mxu0  ;;  %v1905_v58 = vpop.f32.mrb[14].mxu1 }
 0x2a3   :  { %v1858_v25 = vpop.f32.mrb[15].mxu0  ;;  %v1906_v32 = vpop.f32.mrb[15].mxu1 }
 0x2a4   :  { %v1728_v5 = vadd.f32 %v1727_v47, %v1697_v43  ;;  %v1366_v24 = vadd.f32 %v1856_v6, %v3058_v31  ;;  %v1859_v38 = vadd.f32 %v1858_v25, %v1857_v20  ;;  %v3145_v0 = vadd.f32 %v1906_v32, %v1905_v58  ;;  %v3150_v53 = vpop.permute.xlu1 %1619  ;;  %v3160_v32 = vpop.permute.xlu0 %1624 }
 0x2a6   :  { %v1474_v22 = vmax.f32 %v1366_v24, 0.0  ;;  %v1369_v36 = vadd.f32 %v1859_v38, %v3060_v15 }
 0x2a8   :  { %v1698_v54 = vmul.f32 %v3104_v1, %v1474_v22  ;;  %v1475_v14 = vmax.f32 %v1369_v36, 0.0  ;;  %v1860_v56 = vpop.f32.mrb[16].mxu0  ;;  %v1908_v4 = vpop.f32.mrb[16].mxu1 }
 0x2a9   :  { %v1861_v13 = vpop.f32.mrb[17].mxu0  ;;  %v1909_v30 = vpop.f32.mrb[17].mxu1 }
 0x2aa   :  { %v1729_v48 = vadd.f32 %v1728_v5, %v1698_v54  ;;  %v1699_v31 = vmul.f32 %v3106_v37, %v1475_v14  ;;  %v1862_v17 = vadd.f32 %v1861_v13, %v1860_v56  ;;  %v3154_v23 = vadd.f32 %v1909_v30, %v1908_v4  ;;  %v1863_v52 = vpop.f32.mrb[18].mxu0  ;;  %v1911_v3 = vpop.f32.mrb[18].mxu1 }
 0x2ab   :  { %v1864_v15 = vpop.f32.mrb[19].mxu0  ;;  %v1912_v47 = vpop.f32.mrb[19].mxu1 }
 0x2ac   :  { %v1730_v43 = vadd.f32 %v1729_v48, %v1699_v31  ;;  %v1374_v6 = vadd.f32 %v1862_v17, %v3062_v62  ;;  %v1865_v20 = vadd.f32 %v1864_v15, %v1863_v52  ;;  %v3157_v1 = vadd.f32 %v1912_v47, %v1911_v3  ;;  %v3162_v5 = vpop.permute.xlu1 %1629  ;;  %v3172_v47 = vpop.permute.xlu0 %1634 }
 0x2ae   :  { %v1476_v58 = vmax.f32 %v1374_v6, 0.0  ;;  %v1377_v25 = vadd.f32 %v1865_v20, %v3064_v61 }
 0x2b0   :  { %v1700_v37 = vmul.f32 %v3108_v28, %v1476_v58  ;;  %v1477_v24 = vmax.f32 %v1377_v25, 0.0  ;;  %v1866_v38 = vpop.f32.mrb[20].mxu0  ;;  %v1914_v22 = vpop.f32.mrb[20].mxu1 }
 0x2b1   :  { %v1867_v36 = vpop.f32.mrb[21].mxu0  ;;  %v1915_v54 = vpop.f32.mrb[21].mxu1 }
 0x2b2   :  { %v1731_v14 = vadd.f32 %v1730_v43, %v1700_v37  ;;  %v1701_v62 = vmul.f32 %v3110_v11, %v1477_v24  ;;  %v1868_v56 = vadd.f32 %v1867_v36, %v1866_v38  ;;  %v3166_v4 = vadd.f32 %v1915_v54, %v1914_v22  ;;  %v1869_v13 = vpop.f32.mrb[22].mxu0  ;;  %v1917_v30 = vpop.f32.mrb[22].mxu1 }
 0x2b3   :  { %v1870_v61 = vpop.f32.mrb[23].mxu0  ;;  %v1918_v48 = vpop.f32.mrb[23].mxu1 }
 0x2b4   :  { %v1732_v31 = vadd.f32 %v1731_v14, %v1701_v62  ;;  %v1382_v17 = vadd.f32 %v1868_v56, %v3066_v57  ;;  %v1871_v52 = vadd.f32 %v1870_v61, %v1869_v13  ;;  %v3169_v28 = vadd.f32 %v1918_v48, %v1917_v30  ;;  %v3174_v43 = vpop.permute.xlu1 %1639  ;;  %v3184_v48 = vpop.permute.xlu0 %1644 }
 0x2b6   :  { %v1478_v3 = vmax.f32 %v1382_v17, 0.0  ;;  %v1385_v15 = vadd.f32 %v1871_v52, %v3068_v19 }
 0x2b8   :  { %v1702_v11 = vmul.f32 %v3116_v59, %v1478_v3  ;;  %v1479_v6 = vmax.f32 %v1385_v15, 0.0  ;;  %v1872_v20 = vpop.f32.mrb[24].mxu0  ;;  %v1920_v58 = vpop.f32.mrb[24].mxu1 }
 0x2b9   :  { %v1873_v25 = vpop.f32.mrb[25].mxu0  ;;  %v1921_v37 = vpop.f32.mrb[25].mxu1 }
 0x2ba   :  { %v1733_v24 = vadd.f32 %v1732_v31, %v1702_v11  ;;  %v1703_v57 = vmul.f32 %v3118_v8, %v1479_v6  ;;  %v1874_v38 = vadd.f32 %v1873_v25, %v1872_v20  ;;  %v3178_v22 = vadd.f32 %v1921_v37, %v1920_v58  ;;  %v1875_v36 = vpop.f32.mrb[26].mxu0  ;;  %v1923_v54 = vpop.f32.mrb[26].mxu1 }
 0x2bb   :  { %v1876_v19 = vpop.f32.mrb[27].mxu0  ;;  %v1924_v14 = vpop.f32.mrb[27].mxu1 }
 0x2bc   :  { %v1734_v62 = vadd.f32 %v1733_v24, %v1703_v57  ;;  %v1390_v56 = vadd.f32 %v1874_v38, %v3070_v18  ;;  %v1877_v13 = vadd.f32 %v1876_v19, %v1875_v36  ;;  %v3181_v59 = vadd.f32 %v1924_v14, %v1923_v54  ;;  %v3186_v31 = vpop.permute.xlu1 %1649  ;;  %v1655_v54 = vpop.permute.xlu0 %1654 }
 0x2bd   :  { %v1406_v57 = vadd.f32 %v3112_v45, %v3078_v40 }
 0x2be   :  { %v1480_v30 = vmax.f32 %v1390_v56, 0.0  ;;  %v1393_v61 = vadd.f32 %v1877_v13, %v3072_v63  ;;  %v1414_v13 = vadd.f32 %v3120_v46, %v3082_v50 }
 0x2bf   :  { %v1484_v56 = vmax.f32 %v1406_v57, 0.0 }
 0x2c0   :  { %v1704_v8 = vmul.f32 %v3126_v34, %v1480_v30  ;;  %v1481_v17 = vmax.f32 %v1393_v61, 0.0  ;;  %v1878_v52 = vpop.f32.mrb[28].mxu0  ;;  %v1926_v3 = vpop.f32.mrb[28].mxu1 }
 0x2c1   :  { %v1879_v15 = vpop.f32.mrb[29].mxu0  ;;  %v1927_v11 = vpop.f32.mrb[29].mxu1 }
 0x2c2   :  { %v1735_v6 = vadd.f32 %v1734_v62, %v1704_v8  ;;  %v1705_v18 = vmul.f32 %v3128_v44, %v1481_v17  ;;  %v1880_v20 = vadd.f32 %v1879_v15, %v1878_v52  ;;  %v3190_v58 = vadd.f32 %v1927_v11, %v1926_v3  ;;  %v1881_v25 = vpop.f32.mrb[30].mxu0  ;;  %v1929_v37 = vpop.f32.mrb[30].mxu1 }
 0x2c3   :  { %v1882_v63 = vpop.f32.mrb[31].mxu0  ;;  %v1930_v24 = vpop.f32.mrb[31].mxu1  ;;  %v1409_v44 = vadd.f32 %v3114_v39, %v3080_v51  ;;  %v1708_v51 = vmul.f32 %v3148_v60, %v1484_v56  ;;  %v1486_v39 = vmax.f32 %v1414_v13, 0.0 }
 0x2c4   :  { %v1736_v38 = vadd.f32 %v1735_v6, %v1705_v18  ;;  %v1398_v34 = vadd.f32 %v1880_v20, %v3074_v26  ;;  %v1883_v36 = vadd.f32 %v1882_v63, %v1881_v25  ;;  %v3195_v19 = vadd.f32 %v1930_v24, %v1929_v37  ;;  %v1125_v45 = vpop.permute.xlu1 %1124  ;;  %v1660_v52 = vpop.permute.xlu0 %1659 }
 0x2c5   :  { %v1485_v61 = vmax.f32 %v1409_v44, 0.0  ;;  %v1417_v26 = vadd.f32 %v3123_v35, %v3084_v41  ;;  %v1710_v41 = vmul.f32 %v3160_v32, %v1486_v39 }
 0x2c6   :  { %v1482_v14 = vmax.f32 %v1398_v34, 0.0  ;;  %v1401_v62 = vadd.f32 %v1883_v36, %v3076_v29  ;;  %v1422_v29 = vadd.f32 %v3130_v9, %v3086_v21  ;;  %v1433_v9 = vadd.f32 %v3145_v0, %v3092_v27 }
 0x2c7   :  { %v1709_v50 = vmul.f32 %v3150_v53, %v1485_v61  ;;  %v1487_v46 = vmax.f32 %v1417_v26, 0.0  ;;  %v1446_v0 = vadd.f32 %v3166_v4, %v3098_v16 }
 0x2c8   :  { %v1706_v30 = vmul.f32 %v3136_v49, %v1482_v14  ;;  %v1483_v40 = vmax.f32 %v1401_v62, 0.0  ;;  %v1425_v49 = vadd.f32 %v3133_v42, %v3088_v33  ;;  %v1130_v11 = vpop.permute.xlu1 %1129  ;;  %v1488_v35 = vmax.f32 %v1422_v29, 0.0  ;;  %v1665_v6 = vpop.permute.xlu0 %1664 }
 0x2c9   :  { %v1711_v18 = vmul.f32 %v3162_v5, %v1487_v46  ;;  %v1438_v42 = vadd.f32 %v3154_v23, %v3094_v55  ;;  %v1449_v23 = vadd.f32 %v3169_v28, %v1125_v45  ;;  %v1494_v36 = vmax.f32 %v1446_v0, 0.0 }
 0x2ca   :  { %v1737_v8 = vadd.f32 %v1736_v38, %v1706_v30  ;;  %v1707_v17 = vmul.f32 %v3138_v12, %v1483_v40  ;;  %v1430_v12 = vadd.f32 %v3142_v2, %v3090_v10  ;;  %v1489_v21 = vmax.f32 %v1425_v49, 0.0 }
 0x2cb   :  { %v1712_v20 = vmul.f32 %v3172_v47, %v1488_v35  ;;  %v1491_v10 = vmax.f32 %v1433_v9, 0.0  ;;  %v1441_v2 = vadd.f32 %v3157_v1, %v3096_v7  ;;  %v1492_v27 = vmax.f32 %v1438_v42, 0.0 }
 0x2cc   :  { %v1738_v3 = vadd.f32 %v1737_v8, %v1707_v17  ;;  %v1490_v33 = vmax.f32 %v1430_v12, 0.0  ;;  %v1135_v25 = vpop.permute.xlu1 %1134  ;;  %v1713_v37 = vmul.f32 %v3174_v43, %v1489_v21  ;;  %v1670_v63 = vpop.permute.xlu0 %1669  ;;  %v1454_v7 = vadd.f32 %v3178_v22, %v1130_v11  ;;  %v3350_v12 = vld [vmem:[#allocation46_spill] sm:$0xff] }
 0x2cd   :  { %v1715_v57 = vmul.f32 %v3186_v31, %v1491_v10  ;;  %v1493_v55 = vmax.f32 %v1441_v2, 0.0  ;;  %v1716_v34 = vmul.f32 %v1655_v54, %v1492_v27  ;;  %v1457_v62 = vadd.f32 %v3181_v59, %v1135_v25 }
 0x2ce   :  { %v1739_v15 = vadd.f32 %v1738_v3, %v1708_v51  ;;  %v1714_v24 = vmul.f32 %v3184_v48, %v1490_v33  ;;  %v1495_v48 = vmax.f32 %v1449_v23, 0.0  ;;  %v1718_v16 = vmul.f32 %v1665_v6, %v1494_v36 }
 0x2cf   :  { %v1717_v14 = vmul.f32 %v1660_v52, %v1493_v55  ;;  %v1496_v4 = vmax.f32 %v1454_v7, 0.0  ;;  %v1497_v40 = vmax.f32 %v1457_v62, 0.0 }
 0x2d0   :  { %v1740_v60 = vadd.f32 %v1739_v15, %v1709_v50  ;;  %v1140_v43 = vpop.permute.xlu1 %1139  ;;  %v1675_v44 = vpop.permute.xlu0 %1674  ;;  %v1719_v28 = vmul.f32 %v1670_v63, %v1495_v48 }
 0x2d1   :  { %v1462_v31 = vadd.f32 %v3190_v58, %v1140_v43  ;;  %v1720_v22 = vmul.f32 %v1675_v44, %v1496_v4 }
 0x2d2   :  { %v1741_v53 = vadd.f32 %v1740_v60, %v1710_v41  ;;  %v3351_v60 = vsub.s32 0, %v3350_v12 }
 0x2d3   :  { %v1498_v26 = vmax.f32 %v1462_v31, 0.0 }
 0x2d4   :  { %v1742_v32 = vadd.f32 %v1741_v53, %v1711_v18  ;;  %v1145_v30 = vpop.permute.xlu1 %1144  ;;  %v1680_v61 = vpop.permute.xlu0 %1679 }
 0x2d5   :  { %v1465_v54 = vadd.f32 %v3195_v19, %v1145_v30  ;;  %v1721_v17 = vmul.f32 %v1680_v61, %v1497_v40 }
 0x2d6   :  { %v1743_v5 = vadd.f32 %v1742_v32, %v1712_v20 }
 0x2d7   :  { %v1499_v52 = vmax.f32 %v1465_v54, 0.0 }
 0x2d8   :  { %v1744_v47 = vadd.f32 %v1743_v5, %v1713_v37  ;;  %v1685_v59 = vpop.permute.xlu1 %1684  ;;  %v1690_v3 = vpop.permute.xlu0 %1689 }
 0x2d9   :  { %v1722_v39 = vmul.f32 %v1685_v59, %v1498_v26  ;;  %v1723_v50 = vmul.f32 %v1690_v3, %v1499_v52 }
 0x2da   :  { %v1745_v38 = vadd.f32 %v1744_v47, %v1714_v24 }
 0x2dc   :  { %v1746_v1 = vadd.f32 %v1745_v38, %v1715_v57  ;;  %v1765_v19 = vpop.permute.xlu1 %1764 }
 0x2dd   :  { %v1770_v6 = vrot.slane %v1765_v19, %v3351_v60 }
 0x2de   :  { %v1747_v56 = vadd.f32 %v1746_v1, %v1716_v34 }
 0x2e0   :  { %v1748_v13 = vadd.f32 %v1747_v56, %v1717_v14 }
 0x2e2   :  { %v1749_v45 = vadd.f32 %v1748_v13, %v1718_v16 }
 0x2e4   :  { %v1750_v8 = vadd.f32 %v1749_v45, %v1719_v28 }
 0x2e6   :  { %v1751_v51 = vadd.f32 %v1750_v8, %v1720_v22 }
 0x2e8   :  { %v1752_v29 = vadd.f32 %v1751_v51, %v1721_v17 }
 0x2ea   :  { %v1753_v58 = vadd.f32 %v1752_v29, %v1722_v39 }
 0x2ec   :  { %v1754_v46 = vadd.f32 %v1753_v58, %v1723_v50 }
 0x2ee   :  { %v1755_v49 = vrot.slane %v1754_v46, 4 }
 0x2f0   :  { %v1756_v15 = vadd.f32 %v1755_v49, %v1754_v46 }
 0x2f2   :  { %v1757_v11 = vrot.slane %v1756_v15, 2 }
 0x2f4   :  { %v1758_v41 = vadd.f32 %v1757_v11, %v1756_v15 }
 0x2f6   :  { %v1759_v35 = vrot.slane %v1758_v41, 1 }
 0x2f8   :  { %v1760_v18 = vadd.f32 %v1759_v35, %v1758_v41 }
 0x2fa   :  { %v1771_v21 = vadd.f32 %v1770_v6, %v1760_v18 }
 0x2fc   :  { %2019 = vtanh.f32 %v1771_v21 }
 0x306   :  { %v2020_v9 = vpop.eup %2019 }
 0x307   :  { %1773 = vst [vmem:[#allocation3] sm:$0x1] %v2020_v9 }
 0x308   :  { %2032 = shalt.err (!%p2029_p4)
}
 0x309   :  { %s2033_s13 = scalar_lea.hbm %s3254_s7, 16 }
 0x30a   :  { %p2034_p5 = scmp.ne.s32.totalorder %s3254_s7, %s2033_s13  ;;  %p2037_p6 = scmp.lt.u32.totalorder %s2033_s13, %s3254_s7 }
 0x30c   :  { %p2039_p7 = pnand %p2037_p6, %p2034_p5 }
 0x30e   :  { %2042 = shalt.err (!%p2039_p7)
}
 0x30f   :  { %1783 = dma.vmem_to_hbm [thread:$0]  %s1781_s5, 16, %s3254_s7, [#allocation4]  }
 0x310   :  { %2043 = dma.done.wait [#allocation4], 16  }
 0x311   :  { %2044 = vsyncadd [#allocation4], 4294967280 }
 0x312   :  { %1787 = vsyncpa [#allocation4], 1 }

</bundles_post_ra>
